<compile_context>
chip_gen: v7x
topology: tpu7x:2x2x1
jax: 0.10.0
libtpu: 0.0.40
codegen_flags: <defaults>
</compile_context>

<pallas_src>
import functools

import jax
import jax.numpy as jnp
import numpy as np
from jax.experimental import pallas as pl
from jax.experimental.pallas import tpu as pltpu

EPS = 1e-5
_HI = jax.lax.Precision.HIGHEST


# ---------------------------------------------------------------------------
# helpers
# ---------------------------------------------------------------------------
def _pick_row_tile(m, bytes_per_row, vmem_budget=24 << 20):
    """VMEM-budget-aware row tile: the whole array if its double-buffered
    footprint fits the budget (single grid step at small M), else the largest
    multiple-of-8 divisor of m that fits."""
    cap = max(8, vmem_budget // max(1, 2 * bytes_per_row))   # 2x: double-buffered
    if m <= cap:
        return m
    best = 8
    d = 16
    while d <= cap:
        if m % d == 0:
            best = d
        d += 8
    return best


def _pick_h_tile(n, h, w, p, slab_bytes=1 << 20, min_steps=4):
    """H tile for the 3x3-conv stage: bound the live im2col slab (f32, L x 3P)
    and give the grid at least min_steps steps for megacore load-balance."""
    target_rows = max(8, min(512, slab_bytes // max(1, 12 * p)))
    cands = [th for th in range(1, h + 1) if h % th == 0]
    ok = [th for th in cands if th * w <= target_rows and n * (h // th) >= min_steps]
    if ok:
        return max(ok)
    ok = [th for th in cands if th * w <= target_rows]
    if ok:
        return max(ok)
    return min(cands)


def _compiler_params(n_axes):
    # All grid axes are fully parallel (BN partials are reduced outside the
    # kernel), so v7x can shard them across its two TensorCores.  32 MiB scoped
    # VMEM fits every generation; tiles are sized against a 24 MiB budget.
    return pltpu.CompilerParams(
        dimension_semantics=("parallel",) * n_axes,
        vmem_limit_bytes=32 * 1024 * 1024)


def _fold_bn(partial_stats, m, gamma, beta):
    """(T, 2, C) per-tile [sum, sumsq] -> per-channel (scale, bias) such that
    training-mode BN(x) == x * scale + bias (biased variance, eps=1e-5)."""
    tot = jnp.sum(partial_stats, axis=0)                 # (2, C), f32
    mean = tot[0] / m
    var = jnp.maximum(tot[1] / m - mean * mean, 0.0)
    scale = gamma * jax.lax.rsqrt(var + EPS)
    bias = beta - mean * scale
    return scale.reshape(1, -1), bias.reshape(1, -1)


# ---------------------------------------------------------------------------
# kernels
# ---------------------------------------------------------------------------
def _conv1_kernel(x_ref, w_ref, h_ref, stats_ref):
    """h1 = x @ W1 (bf16 in, bf16 MXU, f32 acc) + per-tile sum / sum-of-squares."""
    h = jnp.dot(x_ref[...], w_ref[...], preferred_element_type=jnp.float32)
    s = jnp.sum(h, axis=0, keepdims=True)
    ss = jnp.sum(h * h, axis=0, keepdims=True)
    stats_ref[...] = jnp.concatenate([s, ss], axis=0).reshape(stats_ref.shape)
    h_ref[...] = h.astype(h_ref.dtype)


def _conv2_kernel(h1_ref, s1_ref, b1_ref, w2_ref, h2_ref, stats_ref, *, H, W, TH):
    """ReLU(BN1(h1)) -> 3x3 conv (stride 1, pad 1) on a TH-row tile of image n.

    A (TH+2)*W-row BN'd halo window is built in VMEM; dh=+/-1 taps are
    sublane-aligned row-offset slices of it, dw=+/-1 taps are TWO pltpu.roll's
    (reused across all dh).  The conv is 3 accumulated K=3P matmuls (one per
    kw group), so the live im2col slab stays ~TH*W x 3P."""
    t = pl.program_id(1)
    n_t = pl.num_programs(1)
    P = h1_ref.shape[-1]
    L = TH * W
    HW = H * W

    scale = s1_ref[...]
    bias = b1_ref[...]

    def bn_relu(v):
        return jnp.maximum(v.astype(jnp.float32) * scale + bias, 0.0)

    r0 = pl.multiple_of(t * L, W)
    mid = bn_relu(h1_ref[pl.ds(r0, L), :])
    top_start = pl.multiple_of(jnp.maximum(r0 - W, 0), W)
    bot_start = pl.multiple_of(jnp.minimum(r0 + L, HW - W), W)
    top = bn_relu(h1_ref[pl.ds(top_start, W), :]) * (t > 0).astype(jnp.float32)
    bot = bn_relu(h1_ref[pl.ds(bot_start, W), :]) * (t < n_t - 1).astype(jnp.float32)
    ext = jnp.concatenate([top, mid, bot], axis=0)       # ((TH+2)*W, P) f32 halo window
    E = ext.shape[0]

    ext_p1 = pltpu.roll(ext, shift=1, axis=0)            # ext_p1[j] = ext[j-1]   (dw = -1)
    ext_m1 = pltpu.roll(ext, shift=E - 1, axis=0)        # ext_m1[j] = ext[j+1]   (dw = +1)

    # w coordinate of each output row (r0 is a multiple of W).
    wcol = jax.lax.broadcasted_iota(jnp.int32, (L, 1), 0) % W
    mask_l = (wcol > 0).astype(jnp.float32)              # valid for dw = -1
    mask_r = (wcol < W - 1).astype(jnp.float32)          # valid for dw = +1

    w2 = w2_ref[...]                                     # (9P, P) bf16, (kw, kh, cin)-major

    def dw_operand(arr, mask):
        # kh = 0, 1, 2 taps are row-offset slices (0, W, 2W) of the same array.
        op = jnp.concatenate([arr[0:L], arr[W:W + L], arr[2 * W:2 * W + L]], axis=1)
        if mask is not None:
            op = op * mask
        return op.astype(jnp.bfloat16)

    h2 = jnp.dot(dw_operand(ext_p1, mask_l), w2[0:3 * P],
                 preferred_element_type=jnp.float32)
    h2 = h2 + jnp.dot(dw_operand(ext, None), w2[3 * P:6 * P],
                      preferred_element_type=jnp.float32)
    h2 = h2 + jnp.dot(dw_operand(ext_m1, mask_r), w2[6 * P:9 * P],
                      preferred_element_type=jnp.float32)

    s = jnp.sum(h2, axis=0, keepdims=True)
    ss = jnp.sum(h2 * h2, axis=0, keepdims=True)
    stats_ref[...] = jnp.concatenate([s, ss], axis=0).reshape(stats_ref.shape)
    h2_ref[...] = h2.astype(h2_ref.dtype)


def _conv3_kernel(h2_ref, s2_ref, b2_ref, w3_ref, h3_ref, stats_ref):
    """ReLU(BN2(h2)) -> 1x1 conv to Cout + per-tile sum / sum-of-squares."""
    a2 = jnp.maximum(h2_ref[...].astype(jnp.float32) * s2_ref[...] + b2_ref[...], 0.0)
    h3 = jnp.dot(a2.astype(jnp.bfloat16), w3_ref[...],
                 preferred_element_type=jnp.float32)
    s = jnp.sum(h3, axis=0, keepdims=True)
    ss = jnp.sum(h3 * h3, axis=0, keepdims=True)
    stats_ref[...] = jnp.concatenate([s, ss], axis=0).reshape(stats_ref.shape)
    h3_ref[...] = h3.astype(h3_ref.dtype)


def _bn_add_relu_kernel(h3_ref, x_ref, s3_ref, b3_ref, o_ref):
    """out = ReLU(BN3(h3) + identity residual).  h3 and residual arrive bf16."""
    h3 = h3_ref[...].astype(jnp.float32)
    res = x_ref[...].astype(jnp.float32)
    o_ref[...] = jnp.maximum(h3 * s3_ref[...] + b3_ref[...] + res, 0.0)


# ---------------------------------------------------------------------------
# wrapper
# ---------------------------------------------------------------------------
def bottleneck_forward(x_nchw, p):
    """Pallas Bottleneck forward. Takes / returns NCHW like the PyTorch module."""
    x = jnp.transpose(x_nchw, (0, 2, 3, 1)).astype(jnp.float32)   # NCHW -> NHWC
    N, H, W, Cin = x.shape
    P = p["w1"].shape[0]
    Cout = p["w3"].shape[0]
    assert Cin == Cout, "identity residual requires inplanes == planes * 4"
    assert W % 8 == 0, "TODO(synk): halo slicing assumes W % 8 == 0"
    M = N * H * W
    # bf16 DMA for the conv1 input and the stage-4 residual (kernels cast to
    # bf16 anyway; halves the read traffic on the mem-bound stages).
    x2d = x.reshape(M, Cin).astype(jnp.bfloat16)

    # kernel-layout weights (bf16 MXU operands)
    w1 = jnp.transpose(p["w1"][:, :, 0, 0], (1, 0)).astype(jnp.bfloat16)          # (Cin, P)
    # (kw, kh, cin)-major K rows so each dw group is a contiguous K=3P slice
    w2 = jnp.transpose(p["w2"], (3, 2, 1, 0)).reshape(9 * P, P).astype(jnp.bfloat16)
    w3 = jnp.transpose(p["w3"][:, :, 0, 0], (1, 0)).astype(jnp.bfloat16)          # (P, Cout)

    # ---- stage 1: 1x1 conv + partial BN1 stats -----------------------------
    TM1 = _pick_row_tile(M, 2 * (Cin + P))
    T1 = M // TM1
    h1, st1 = pl.pallas_call(
        _conv1_kernel,
        grid=(T1,),
        in_specs=[pl.BlockSpec((TM1, Cin), lambda i: (i, 0)),
                  pl.BlockSpec((Cin, P), lambda i: (0, 0))],
        out_specs=(pl.BlockSpec((TM1, P), lambda i: (i, 0)),
                   pl.BlockSpec((1, 2, P), lambda i: (i, 0, 0))),
        out_shape=(jax.ShapeDtypeStruct((M, P), jnp.bfloat16),
                   jax.ShapeDtypeStruct((T1, 2, P), jnp.float32)),
        compiler_params=_compiler_params(1),
        cost_estimate=pl.CostEstimate(flops=2 * M * Cin * P, transcendentals=0,
                                      bytes_accessed=2 * M * Cin + 2 * Cin * P + 2 * M * P),
    )(x2d, w1)
    scale1, bias1 = _fold_bn(st1, M, p["g1"], p["b1"])

    # ---- stage 2: BN1+ReLU -> 3x3 conv, tiled over (N, H-tiles) ------------
    TH = _pick_h_tile(N, H, W, P)
    T_h = H // TH
    L = TH * W
    h2, st2 = pl.pallas_call(
        functools.partial(_conv2_kernel, H=H, W=W, TH=TH),
        grid=(N, T_h),
        in_specs=[pl.BlockSpec((H * W, P), lambda n, t: (n, 0)),   # image-resident across t
                  pl.BlockSpec((1, P), lambda n, t: (0, 0)),
                  pl.BlockSpec((1, P), lambda n, t: (0, 0)),
                  pl.BlockSpec((9 * P, P), lambda n, t: (0, 0))],
        out_specs=(pl.BlockSpec((L, P), lambda n, t: (n * T_h + t, 0)),
                   pl.BlockSpec((1, 2, P), lambda n, t: (n * T_h + t, 0, 0))),
        out_shape=(jax.ShapeDtypeStruct((M, P), jnp.bfloat16),
                   jax.ShapeDtypeStruct((N * T_h, 2, P), jnp.float32)),
        compiler_params=_compiler_params(2),
        cost_estimate=pl.CostEstimate(flops=2 * M * 9 * P * P, transcendentals=0,
                                      bytes_accessed=2 * M * P + 2 * 9 * P * P + 2 * M * P),
    )(h1, scale1, bias1, w2)
    scale2, bias2 = _fold_bn(st2, M, p["g2"], p["b2"])

    # ---- stage 3: BN2+ReLU -> 1x1 conv to Cout + partial BN3 stats ---------
    TM3 = _pick_row_tile(M, 2 * (P + Cout))
    T3 = M // TM3
    h3, st3 = pl.pallas_call(
        _conv3_kernel,
        grid=(T3,),
        in_specs=[pl.BlockSpec((TM3, P), lambda i: (i, 0)),
                  pl.BlockSpec((1, P), lambda i: (0, 0)),
                  pl.BlockSpec((1, P), lambda i: (0, 0)),
                  pl.BlockSpec((P, Cout), lambda i: (0, 0))],
        out_specs=(pl.BlockSpec((TM3, Cout), lambda i: (i, 0)),
                   pl.BlockSpec((1, 2, Cout), lambda i: (i, 0, 0))),
        out_shape=(jax.ShapeDtypeStruct((M, Cout), jnp.bfloat16),
                   jax.ShapeDtypeStruct((T3, 2, Cout), jnp.float32)),
        compiler_params=_compiler_params(1),
        cost_estimate=pl.CostEstimate(flops=2 * M * P * Cout, transcendentals=0,
                                      bytes_accessed=2 * M * P + 2 * P * Cout + 2 * M * Cout),
    )(h2, scale2, bias2, w3)
    scale3, bias3 = _fold_bn(st3, M, p["g3"], p["b3"])

    # ---- stage 4: BN3 + residual + ReLU (lane-dense Cout) ------------------
    TM4 = _pick_row_tile(M, 8 * Cout)
    T4 = M // TM4
    out2d = pl.pallas_call(
        _bn_add_relu_kernel,
        grid=(T4,),
        in_specs=[pl.BlockSpec((TM4, Cout), lambda i: (i, 0)),
                  pl.BlockSpec((TM4, Cout), lambda i: (i, 0)),
                  pl.BlockSpec((1, Cout), lambda i: (0, 0)),
                  pl.BlockSpec((1, Cout), lambda i: (0, 0))],
        out_specs=pl.BlockSpec((TM4, Cout), lambda i: (i, 0)),
        out_shape=jax.ShapeDtypeStruct((M, Cout), jnp.float32),
        compiler_params=_compiler_params(1),
        cost_estimate=pl.CostEstimate(flops=3 * M * Cout, transcendentals=0,
                                      bytes_accessed=8 * M * Cout),
    )(h3, x2d, scale3, bias3)
    # TODO(synk): emit bf16 here when this block feeds another Bottleneck.

    out = out2d.reshape(N, H, W, Cout)
    return jnp.transpose(out, (0, 3, 1, 2))   # NHWC -> NCHW


# ---------------------------------------------------------------------------
# parameters & reference
# ---------------------------------------------------------------------------
def make_params(key, inplanes, planes):
    """Deterministic synthetic parameters in PyTorch layouts."""
    ks = jax.random.split(key, 9)
    w1 = 0.05 * jax.random.normal(ks[0], (planes, inplanes, 1, 1), jnp.float32)
    w2 = 0.05 * jax.random.normal(ks[1], (planes, planes, 3, 3), jnp.float32)
    w3 = 0.05 * jax.random.normal(ks[2], (planes * 4, planes, 1, 1), jnp.float32)
    g1 = 1.0 + 0.1 * jax.random.normal(ks[3], (planes,), jnp.float32)
    b1 = 0.1 * jax.random.normal(ks[4], (planes,), jnp.float32)
    g2 = 1.0 + 0.1 * jax.random.normal(ks[5], (planes,), jnp.float32)
    b2 = 0.1 * jax.random.normal(ks[6], (planes,), jnp.float32)
    g3 = 1.0 + 0.1 * jax.random.normal(ks[7], (planes * 4,), jnp.float32)
    b3 = 0.1 * jax.random.normal(ks[8], (planes * 4,), jnp.float32)
    return dict(w1=w1, w2=w2, w3=w3, g1=g1, b1=b1, g2=g2, b2=b2, g3=g3, b3=b3)


def bottleneck_reference(x_nchw, p, *, cast=None):
    """Pure-JAX reference (lax conv).  cast=jnp.bfloat16 mirrors the kernel's
    dtype policy (bf16 matmul operands, bf16 HBM intermediates, bf16 residual
    DMA, f32 stats / accumulation)."""
    x = jnp.transpose(x_nchw, (0, 2, 3, 1)).astype(jnp.float32)
    dn = ("NHWC", "HWIO", "NHWC")

    def conv(inp, w_oihw, pad):
        w = jnp.transpose(w_oihw, (2, 3, 1, 0))          # OIHW -> HWIO
        if cast is not None:
            inp, w = inp.astype(cast), w.astype(cast)
        return jax.lax.conv_general_dilated(inp, w, (1, 1), pad,
                                            dimension_numbers=dn,
                                            preferred_element_type=jnp.float32,
                                            precision=_HI)

    def bn(h, g, b):
        m = h.shape[0] * h.shape[1] * h.shape[2]
        mean = jnp.sum(h, axis=(0, 1, 2)) / m
        var = jnp.maximum(jnp.sum(h * h, axis=(0, 1, 2)) / m - mean * mean, 0.0)
        scale = g * jax.lax.rsqrt(var + EPS)
        if cast is not None:                              # emulate bf16 HBM storage
            h = h.astype(cast).astype(jnp.float32)
        return h * scale + (b - mean * scale)

    h = jnp.maximum(bn(conv(x, p["w1"], "VALID"), p["g1"], p["b1"]), 0.0)
    h = jnp.maximum(bn(conv(h, p["w2"], "SAME"), p["g2"], p["b2"]), 0.0)
    h = bn(conv(h, p["w3"], "VALID"), p["g3"], p["b3"])
    res = x if cast is None else x.astype(cast).astype(jnp.float32)   # bf16 residual DMA
    out = jnp.maximum(h + res, 0.0)
    return jnp.transpose(out, (0, 3, 1, 2))


# ---------------------------------------------------------------------------
# main
# ---------------------------------------------------------------------------
if __name__ == "__main__":
    planes = 32
    inplanes = planes * 4          # identity residual (stride=1, downsample=None)
    N, H, W = 2, 8, 8

    key = jax.random.PRNGKey(0)
    k_x, k_p = jax.random.split(key)
    x = jax.random.normal(k_x, (N, inplanes, H, W), jnp.float32)   # NCHW like PyTorch
    params = make_params(k_p, inplanes, planes)

    out = jax.block_until_ready(jax.jit(bottleneck_forward)(x, params))
    ref_bf16 = jax.block_until_ready(bottleneck_reference(x, params, cast=jnp.bfloat16))
    ref_f32 = jax.block_until_ready(bottleneck_reference(x, params))

    assert out.shape == (N, inplanes, H, W) and out.dtype == jnp.float32
    # Tight check against a reference that mirrors the kernel's bf16 dtype
    # policy — validates conv taps / halo / BN folding / residual structure.
    np.testing.assert_allclose(np.asarray(out), np.asarray(ref_bf16),
                               rtol=2e-3, atol=2e-3)
    # Loose sanity bound vs full-f32 semantics (bf16 MXU inputs / bf16 HBM
    # intermediates are a deliberate perf tradeoff).
    np.testing.assert_allclose(np.asarray(out), np.asarray(ref_f32),
                               rtol=1e-1, atol=1e-1)
    print("KERNEL_OK")
</pallas_src>

<mosaic_0001>
module attributes {stable_mosaic.version = 11 : i64} {
  func.func @_conv1_kernel(%arg0: i32, %arg1: memref<128x128xbf16, #tpu.memory_space<vmem>>, %arg2: memref<128x32xbf16, #tpu.memory_space<vmem>>, %arg3: memref<128x32xbf16, #tpu.memory_space<vmem>>, %arg4: memref<1x2x32xf32, #tpu.memory_space<vmem>>) attributes {dimension_semantics = [#tpu.dimension_semantics<parallel>], iteration_bounds = array<i64: 1>, scalar_prefetch = 0 : i64, scratch_operands = 0 : i64, tpu.core_type = #tpu.core_type<tc>, window_params = [{transform_indices = @transform_0, window_bounds = array<i64: 128, 128>}, {pipeline_mode = #tpu.pipeline_mode<synchronous>, transform_indices = @transform_1, window_bounds = array<i64: 128, 32>}, {transform_indices = @transform_2, window_bounds = array<i64: 128, 32>}, {transform_indices = @transform_3, window_bounds = array<i64: 1, 2, 32>}]} {
    %c0 = arith.constant 0 : index
    %c0_0 = arith.constant 0 : index
    %0 = vector.load %arg1[%c0, %c0_0] : memref<128x128xbf16, #tpu.memory_space<vmem>>, vector<128x128xbf16>
    %c0_1 = arith.constant 0 : index
    %c0_2 = arith.constant 0 : index
    %1 = vector.load %arg2[%c0_1, %c0_2] : memref<128x32xbf16, #tpu.memory_space<vmem>>, vector<128x32xbf16>
    %cst = arith.constant dense<0.000000e+00> : vector<128x32xf32>
    %2 = tpu.matmul %0, %1, %cst {dimension_numbers = #tpu.dot_dimension_numbers<[1], [0], [0], [1], [0, 0, 1, 1], [], []>} : vector<128x128xbf16>, vector<128x32xbf16>, vector<128x32xf32> -> vector<128x32xf32>
    %cst_3 = arith.constant dense<0.000000e+00> : vector<32xf32>
    %3 = vector.multi_reduction <add>, %2, %cst_3 [0] : vector<128x32xf32> to vector<32xf32>
    %4 = vector.shape_cast %3 : vector<32xf32> to vector<1x32xf32>
    %5 = arith.mulf %2, %2 : vector<128x32xf32>
    %cst_4 = arith.constant dense<0.000000e+00> : vector<32xf32>
    %6 = vector.multi_reduction <add>, %5, %cst_4 [0] : vector<128x32xf32> to vector<32xf32>
    %7 = vector.shape_cast %6 : vector<32xf32> to vector<1x32xf32>
    %8 = tpu.concatenate %4, %7 in 0 : vector<1x32xf32>, vector<1x32xf32> -> vector<2x32xf32>
    %9 = vector.shape_cast %8 : vector<2x32xf32> to vector<1x2x32xf32>
    %c0_5 = arith.constant 0 : index
    %c0_6 = arith.constant 0 : index
    %c0_7 = arith.constant 0 : index
    %10 = vector.load %arg4[%c0_5, %c0_6, %c0_7] : memref<1x2x32xf32, #tpu.memory_space<vmem>>, vector<1x2x32xf32>
    tpu.vector_store %arg4[%c0_5, %c0_6, %c0_7], %9 {strides = array<i32>} : memref<1x2x32xf32, #tpu.memory_space<vmem>>, vector<1x2x32xf32>,
    %11 = arith.truncf %2 : vector<128x32xf32> to vector<128x32xbf16>
    %c0_8 = arith.constant 0 : index
    %c0_9 = arith.constant 0 : index
    %12 = vector.load %arg3[%c0_8, %c0_9] : memref<128x32xbf16, #tpu.memory_space<vmem>>, vector<128x32xbf16>
    tpu.vector_store %arg3[%c0_8, %c0_9], %11 {strides = array<i32>} : memref<128x32xbf16, #tpu.memory_space<vmem>>, vector<128x32xbf16>,
    return
  }
  func.func @transform_0(%arg0: i32) -> (i32, i32) {
    %c0_i32 = arith.constant 0 : i32
    %c0_i32_0 = arith.constant 0 : i32
    return %arg0, %c0_i32 : i32, i32
  }
  func.func @transform_1(%arg0: i32) -> (i32, i32) {
    %c0_i32 = arith.constant 0 : i32
    %c0_i32_0 = arith.constant 0 : i32
    %c0_i32_1 = arith.constant 0 : i32
    return %c0_i32, %c0_i32_0 : i32, i32
  }
  func.func @transform_2(%arg0: i32) -> (i32, i32) {
    %c0_i32 = arith.constant 0 : i32
    %c0_i32_0 = arith.constant 0 : i32
    return %arg0, %c0_i32 : i32, i32
  }
  func.func @transform_3(%arg0: i32) -> (i32, i32, i32) {
    %c0_i32 = arith.constant 0 : i32
    %c0_i32_0 = arith.constant 0 : i32
    %c0_i32_1 = arith.constant 0 : i32
    return %arg0, %c0_i32, %c0_i32_0 : i32, i32, i32
  }
}

module attributes {stable_mosaic.version = 11 : i64} {
  func.func @_conv2_kernel(%arg0: i32, %arg1: i32, %arg2: memref<64x32xbf16, #tpu.memory_space<vmem>>, %arg3: memref<1x32xf32, #tpu.memory_space<vmem>>, %arg4: memref<1x32xf32, #tpu.memory_space<vmem>>, %arg5: memref<288x32xbf16, #tpu.memory_space<vmem>>, %arg6: memref<32x32xbf16, #tpu.memory_space<vmem>>, %arg7: memref<1x2x32xf32, #tpu.memory_space<vmem>>) attributes {dimension_semantics = [#tpu.dimension_semantics<parallel>, #tpu.dimension_semantics<parallel>], iteration_bounds = array<i64: 2, 2>, scalar_prefetch = 0 : i64, scratch_operands = 0 : i64, tpu.core_type = #tpu.core_type<tc>, window_params = [{transform_indices = @transform_0, window_bounds = array<i64: 64, 32>}, {pipeline_mode = #tpu.pipeline_mode<synchronous>, transform_indices = @transform_1, window_bounds = array<i64: 1, 32>}, {pipeline_mode = #tpu.pipeline_mode<synchronous>, transform_indices = @transform_2, window_bounds = array<i64: 1, 32>}, {pipeline_mode = #tpu.pipeline_mode<synchronous>, transform_indices = @transform_3, window_bounds = array<i64: 288, 32>}, {transform_indices = @transform_4, window_bounds = array<i64: 32, 32>}, {transform_indices = @transform_5, window_bounds = array<i64: 1, 2, 32>}]} {
    %c0 = arith.constant 0 : index
    %c0_0 = arith.constant 0 : index
    %0 = vector.load %arg3[%c0, %c0_0] : memref<1x32xf32, #tpu.memory_space<vmem>>, vector<1x32xf32>
    %c0_1 = arith.constant 0 : index
    %c0_2 = arith.constant 0 : index
    %1 = vector.load %arg4[%c0_1, %c0_2] : memref<1x32xf32, #tpu.memory_space<vmem>>, vector<1x32xf32>
    %c32_i32 = arith.constant 32 : i32
    %2 = arith.muli %arg1, %c32_i32 : i32
    %3 = tpu.assume_multiple %2, 8 : i32
    %4 = arith.index_cast %3 : i32 to index
    %c0_3 = arith.constant 0 : index
    %5 = vector.load %arg2[%4, %c0_3] : memref<64x32xbf16, #tpu.memory_space<vmem>>, vector<32x32xbf16>
    %6 = arith.extf %5 : vector<32x32xbf16> to vector<32x32xf32>
    %7 = vector.broadcast %0 : vector<1x32xf32> to vector<32x32xf32>
    %8 = arith.mulf %6, %7 : vector<32x32xf32>
    %9 = vector.broadcast %1 : vector<1x32xf32> to vector<32x32xf32>
    %10 = arith.addf %8, %9 : vector<32x32xf32>
    %cst = arith.constant 0.000000e+00 : f32
    %11 = vector.broadcast %cst : f32 to vector<32x32xf32>
    %12 = arith.maximumf %10, %11 : vector<32x32xf32>
    %c8_i32 = arith.constant 8 : i32
    %13 = arith.subi %3, %c8_i32 : i32
    %c0_i32 = arith.constant 0 : i32
    %14 = arith.maxsi %13, %c0_i32 : i32
    %15 = tpu.assume_multiple %14, 8 : i32
    %c32_i32_4 = arith.constant 32 : i32
    %16 = arith.addi %3, %c32_i32_4 : i32
    %c56_i32 = arith.constant 56 : i32
    %17 = arith.minsi %16, %c56_i32 : i32
    %18 = tpu.assume_multiple %17, 8 : i32
    %19 = arith.index_cast %15 : i32 to index
    %c0_5 = arith.constant 0 : index
    %20 = vector.load %arg2[%19, %c0_5] : memref<64x32xbf16, #tpu.memory_space<vmem>>, vector<8x32xbf16>
    %21 = arith.extf %20 : vector<8x32xbf16> to vector<8x32xf32>
    %22 = vector.broadcast %0 : vector<1x32xf32> to vector<8x32xf32>
    %23 = arith.mulf %21, %22 : vector<8x32xf32>
    %24 = vector.broadcast %1 : vector<1x32xf32> to vector<8x32xf32>
    %25 = arith.addf %23, %24 : vector<8x32xf32>
    %cst_6 = arith.constant 0.000000e+00 : f32
    %26 = vector.broadcast %cst_6 : f32 to vector<8x32xf32>
    %27 = arith.maximumf %25, %26 : vector<8x32xf32>
    %c0_i32_7 = arith.constant 0 : i32
    %28 = arith.cmpi sgt, %arg1, %c0_i32_7 : i32
    %29 = arith.extui %28 : i1 to i32
    %30 = arith.sitofp %29 : i32 to f32
    %31 = vector.broadcast %30 : f32 to vector<8x32xf32>
    %32 = arith.mulf %27, %31 : vector<8x32xf32>
    %33 = arith.index_cast %18 : i32 to index
    %c0_8 = arith.constant 0 : index
    %34 = vector.load %arg2[%33, %c0_8] : memref<64x32xbf16, #tpu.memory_space<vmem>>, vector<8x32xbf16>
    %35 = arith.extf %34 : vector<8x32xbf16> to vector<8x32xf32>
    %36 = vector.broadcast %0 : vector<1x32xf32> to vector<8x32xf32>
    %37 = arith.mulf %35, %36 : vector<8x32xf32>
    %38 = vector.broadcast %1 : vector<1x32xf32> to vector<8x32xf32>
    %39 = arith.addf %37, %38 : vector<8x32xf32>
    %cst_9 = arith.constant 0.000000e+00 : f32
    %40 = vector.broadcast %cst_9 : f32 to vector<8x32xf32>
    %41 = arith.maximumf %39, %40 : vector<8x32xf32>
    %c1_i32 = arith.constant 1 : i32
    %42 = arith.cmpi slt, %arg1, %c1_i32 : i32
    %43 = arith.extui %42 : i1 to i32
    %44 = arith.sitofp %43 : i32 to f32
    %45 = vector.broadcast %44 : f32 to vector<8x32xf32>
    %46 = arith.mulf %41, %45 : vector<8x32xf32>
    %47 = tpu.concatenate %32, %12, %46 in 0 : vector<8x32xf32>, vector<32x32xf32>, vector<8x32xf32> -> vector<48x32xf32>
    %c1_i32_10 = arith.constant 1 : i32
    %48 = tpu.dynamic_rotate %47 by %c1_i32_10 dim 0 : vector<48x32xf32>, i32 -> vector<48x32xf32>
    %c47_i32 = arith.constant 47 : i32
    %49 = tpu.dynamic_rotate %47 by %c47_i32 dim 0 : vector<48x32xf32>, i32 -> vector<48x32xf32>
    %50 = tpu.iota {dimensions = array<i32: 0>} : vector<32x1xi32>
    %c8_i32_11 = arith.constant 8 : i32
    %c0_i32_12 = arith.constant 0 : i32
    %51 = arith.cmpi eq, %c8_i32_11, %c0_i32_12 : i32
    %c1_i32_13 = arith.constant 1 : i32
    %52 = arith.select %51, %c1_i32_13, %c8_i32_11 : i32
    %53 = vector.broadcast %52 : i32 to vector<32x1xi32>
    %54 = arith.remsi %50, %53 : vector<32x1xi32>
    %c0_i32_14 = arith.constant 0 : i32
    %55 = vector.broadcast %c0_i32_14 : i32 to vector<32x1xi32>
    %56 = arith.cmpi ne, %54, %55 : vector<32x1xi32>
    %c0_i32_15 = arith.constant 0 : i32
    %57 = vector.broadcast %c0_i32_15 : i32 to vector<32x1xi32>
    %58 = arith.cmpi slt, %54, %57 : vector<32x1xi32>
    %c0_i32_16 = arith.constant 0 : i32
    %59 = arith.cmpi slt, %52, %c0_i32_16 : i32
    %60 = vector.broadcast %59 : i1 to vector<32x1xi1>
    %61 = vector.broadcast %60 : vector<32x1xi1> to vector<32x1xi1>
    %62 = arith.xori %58, %61 : vector<32x1xi1>
    %63 = arith.andi %62, %56 : vector<32x1xi1>
    %64 = vector.broadcast %52 : i32 to vector<32x1xi32>
    %65 = arith.addi %54, %64 : vector<32x1xi32>
    %66 = arith.select %63, %65, %54 : vector<32x1xi1>, vector<32x1xi32>
    %c0_i32_17 = arith.constant 0 : i32
    %67 = vector.broadcast %c0_i32_17 : i32 to vector<32x1xi32>
    %68 = arith.cmpi sgt, %66, %67 : vector<32x1xi32>
    %69 = arith.extui %68 : vector<32x1xi1> to vector<32x1xi32>
    %70 = arith.sitofp %69 : vector<32x1xi32> to vector<32x1xf32>
    %c7_i32 = arith.constant 7 : i32
    %71 = vector.broadcast %c7_i32 : i32 to vector<32x1xi32>
    %72 = arith.cmpi slt, %66, %71 : vector<32x1xi32>
    %73 = arith.extui %72 : vector<32x1xi1> to vector<32x1xi32>
    %74 = arith.sitofp %73 : vector<32x1xi32> to vector<32x1xf32>
    %c0_18 = arith.constant 0 : index
    %c0_19 = arith.constant 0 : index
    %75 = vector.load %arg5[%c0_18, %c0_19] : memref<288x32xbf16, #tpu.memory_space<vmem>>, vector<288x32xbf16>
    %76 = vector.extract_strided_slice %48 {offsets = [0, 0], sizes = [32, 32], strides = [1, 1]} : vector<48x32xf32> to vector<32x32xf32>
    %77 = vector.extract_strided_slice %48 {offsets = [8, 0], sizes = [32, 32], strides = [1, 1]} : vector<48x32xf32> to vector<32x32xf32>
    %78 = vector.extract_strided_slice %48 {offsets = [16, 0], sizes = [32, 32], strides = [1, 1]} : vector<48x32xf32> to vector<32x32xf32>
    %79 = tpu.concatenate %76, %77, %78 in 1 : vector<32x32xf32>, vector<32x32xf32>, vector<32x32xf32> -> vector<32x96xf32>
    %80 = vector.broadcast %70 : vector<32x1xf32> to vector<32x96xf32>
    %81 = arith.mulf %79, %80 : vector<32x96xf32>
    %82 = arith.truncf %81 : vector<32x96xf32> to vector<32x96xbf16>
    %83 = vector.extract_strided_slice %75 {offsets = [0, 0], sizes = [96, 32], strides = [1, 1]} : vector<288x32xbf16> to vector<96x32xbf16>
    %cst_20 = arith.constant dense<0.000000e+00> : vector<32x32xf32>
    %84 = tpu.matmul %82, %83, %cst_20 {dimension_numbers = #tpu.dot_dimension_numbers<[1], [0], [0], [1], [0, 0, 1, 1], [], []>} : vector<32x96xbf16>, vector<96x32xbf16>, vector<32x32xf32> -> vector<32x32xf32>
    %85 = vector.extract_strided_slice %47 {offsets = [0, 0], sizes = [32, 32], strides = [1, 1]} : vector<48x32xf32> to vector<32x32xf32>
    %86 = vector.extract_strided_slice %47 {offsets = [8, 0], sizes = [32, 32], strides = [1, 1]} : vector<48x32xf32> to vector<32x32xf32>
    %87 = vector.extract_strided_slice %47 {offsets = [16, 0], sizes = [32, 32], strides = [1, 1]} : vector<48x32xf32> to vector<32x32xf32>
    %88 = tpu.concatenate %85, %86, %87 in 1 : vector<32x32xf32>, vector<32x32xf32>, vector<32x32xf32> -> vector<32x96xf32>
    %89 = arith.truncf %88 : vector<32x96xf32> to vector<32x96xbf16>
    %90 = vector.extract_strided_slice %75 {offsets = [96, 0], sizes = [96, 32], strides = [1, 1]} : vector<288x32xbf16> to vector<96x32xbf16>
    %cst_21 = arith.constant dense<0.000000e+00> : vector<32x32xf32>
    %91 = tpu.matmul %89, %90, %cst_21 {dimension_numbers = #tpu.dot_dimension_numbers<[1], [0], [0], [1], [0, 0, 1, 1], [], []>} : vector<32x96xbf16>, vector<96x32xbf16>, vector<32x32xf32> -> vector<32x32xf32>
    %92 = arith.addf %84, %91 : vector<32x32xf32>
    %93 = vector.extract_strided_slice %49 {offsets = [0, 0], sizes = [32, 32], strides = [1, 1]} : vector<48x32xf32> to vector<32x32xf32>
    %94 = vector.extract_strided_slice %49 {offsets = [8, 0], sizes = [32, 32], strides = [1, 1]} : vector<48x32xf32> to vector<32x32xf32>
    %95 = vector.extract_strided_slice %49 {offsets = [16, 0], sizes = [32, 32], strides = [1, 1]} : vector<48x32xf32> to vector<32x32xf32>
    %96 = tpu.concatenate %93, %94, %95 in 1 : vector<32x32xf32>, vector<32x32xf32>, vector<32x32xf32> -> vector<32x96xf32>
    %97 = vector.broadcast %74 : vector<32x1xf32> to vector<32x96xf32>
    %98 = arith.mulf %96, %97 : vector<32x96xf32>
    %99 = arith.truncf %98 : vector<32x96xf32> to vector<32x96xbf16>
    %100 = vector.extract_strided_slice %75 {offsets = [192, 0], sizes = [96, 32], strides = [1, 1]} : vector<288x32xbf16> to vector<96x32xbf16>
    %cst_22 = arith.constant dense<0.000000e+00> : vector<32x32xf32>
    %101 = tpu.matmul %99, %100, %cst_22 {dimension_numbers = #tpu.dot_dimension_numbers<[1], [0], [0], [1], [0, 0, 1, 1], [], []>} : vector<32x96xbf16>, vector<96x32xbf16>, vector<32x32xf32> -> vector<32x32xf32>
    %102 = arith.addf %92, %101 : vector<32x32xf32>
    %cst_23 = arith.constant dense<0.000000e+00> : vector<32xf32>
    %103 = vector.multi_reduction <add>, %102, %cst_23 [0] : vector<32x32xf32> to vector<32xf32>
    %104 = vector.shape_cast %103 : vector<32xf32> to vector<1x32xf32>
    %105 = arith.mulf %102, %102 : vector<32x32xf32>
    %cst_24 = arith.constant dense<0.000000e+00> : vector<32xf32>
    %106 = vector.multi_reduction <add>, %105, %cst_24 [0] : vector<32x32xf32> to vector<32xf32>
    %107 = vector.shape_cast %106 : vector<32xf32> to vector<1x32xf32>
    %108 = tpu.concatenate %104, %107 in 0 : vector<1x32xf32>, vector<1x32xf32> -> vector<2x32xf32>
    %109 = vector.shape_cast %108 : vector<2x32xf32> to vector<1x2x32xf32>
    %c0_25 = arith.constant 0 : index
    %c0_26 = arith.constant 0 : index
    %c0_27 = arith.constant 0 : index
    %110 = vector.load %arg7[%c0_25, %c0_26, %c0_27] : memref<1x2x32xf32, #tpu.memory_space<vmem>>, vector<1x2x32xf32>
    tpu.vector_store %arg7[%c0_25, %c0_26, %c0_27], %109 {strides = array<i32>} : memref<1x2x32xf32, #tpu.memory_space<vmem>>, vector<1x2x32xf32>,
    %111 = arith.truncf %102 : vector<32x32xf32> to vector<32x32xbf16>
    %c0_28 = arith.constant 0 : index
    %c0_29 = arith.constant 0 : index
    %112 = vector.load %arg6[%c0_28, %c0_29] : memref<32x32xbf16, #tpu.memory_space<vmem>>, vector<32x32xbf16>
    tpu.vector_store %arg6[%c0_28, %c0_29], %111 {strides = array<i32>} : memref<32x32xbf16, #tpu.memory_space<vmem>>, vector<32x32xbf16>,
    return
  }
  func.func @transform_0(%arg0: i32, %arg1: i32) -> (i32, i32) {
    %c0_i32 = arith.constant 0 : i32
    %c0_i32_0 = arith.constant 0 : i32
    return %arg0, %c0_i32 : i32, i32
  }
  func.func @transform_1(%arg0: i32, %arg1: i32) -> (i32, i32) {
    %c0_i32 = arith.constant 0 : i32
    %c0_i32_0 = arith.constant 0 : i32
    %c0_i32_1 = arith.constant 0 : i32
    return %c0_i32, %c0_i32_0 : i32, i32
  }
  func.func @transform_2(%arg0: i32, %arg1: i32) -> (i32, i32) {
    %c0_i32 = arith.constant 0 : i32
    %c0_i32_0 = arith.constant 0 : i32
    %c0_i32_1 = arith.constant 0 : i32
    return %c0_i32, %c0_i32_0 : i32, i32
  }
  func.func @transform_3(%arg0: i32, %arg1: i32) -> (i32, i32) {
    %c0_i32 = arith.constant 0 : i32
    %c0_i32_0 = arith.constant 0 : i32
    %c0_i32_1 = arith.constant 0 : i32
    return %c0_i32, %c0_i32_0 : i32, i32
  }
  func.func @transform_4(%arg0: i32, %arg1: i32) -> (i32, i32) {
    %c2_i32 = arith.constant 2 : i32
    %0 = arith.muli %arg0, %c2_i32 : i32
    %1 = arith.addi %0, %arg1 : i32
    %c0_i32 = arith.constant 0 : i32
    %c0_i32_0 = arith.constant 0 : i32
    return %1, %c0_i32 : i32, i32
  }
  func.func @transform_5(%arg0: i32, %arg1: i32) -> (i32, i32, i32) {
    %c2_i32 = arith.constant 2 : i32
    %0 = arith.muli %arg0, %c2_i32 : i32
    %1 = arith.addi %0, %arg1 : i32
    %c0_i32 = arith.constant 0 : i32
    %c0_i32_0 = arith.constant 0 : i32
    %c0_i32_1 = arith.constant 0 : i32
    return %1, %c0_i32, %c0_i32_0 : i32, i32, i32
  }
}

module attributes {stable_mosaic.version = 11 : i64} {
  func.func @_conv3_kernel(%arg0: i32, %arg1: memref<128x32xbf16, #tpu.memory_space<vmem>>, %arg2: memref<1x32xf32, #tpu.memory_space<vmem>>, %arg3: memref<1x32xf32, #tpu.memory_space<vmem>>, %arg4: memref<32x128xbf16, #tpu.memory_space<vmem>>, %arg5: memref<128x128xbf16, #tpu.memory_space<vmem>>, %arg6: memref<1x2x128xf32, #tpu.memory_space<vmem>>) attributes {dimension_semantics = [#tpu.dimension_semantics<parallel>], iteration_bounds = array<i64: 1>, scalar_prefetch = 0 : i64, scratch_operands = 0 : i64, tpu.core_type = #tpu.core_type<tc>, window_params = [{transform_indices = @transform_0, window_bounds = array<i64: 128, 32>}, {pipeline_mode = #tpu.pipeline_mode<synchronous>, transform_indices = @transform_1, window_bounds = array<i64: 1, 32>}, {pipeline_mode = #tpu.pipeline_mode<synchronous>, transform_indices = @transform_2, window_bounds = array<i64: 1, 32>}, {pipeline_mode = #tpu.pipeline_mode<synchronous>, transform_indices = @transform_3, window_bounds = array<i64: 32, 128>}, {transform_indices = @transform_4, window_bounds = array<i64: 128, 128>}, {transform_indices = @transform_5, window_bounds = array<i64: 1, 2, 128>}]} {
    %c0 = arith.constant 0 : index
    %c0_0 = arith.constant 0 : index
    %0 = vector.load %arg1[%c0, %c0_0] : memref<128x32xbf16, #tpu.memory_space<vmem>>, vector<128x32xbf16>
    %1 = arith.extf %0 : vector<128x32xbf16> to vector<128x32xf32>
    %c0_1 = arith.constant 0 : index
    %c0_2 = arith.constant 0 : index
    %2 = vector.load %arg2[%c0_1, %c0_2] : memref<1x32xf32, #tpu.memory_space<vmem>>, vector<1x32xf32>
    %3 = vector.broadcast %2 : vector<1x32xf32> to vector<128x32xf32>
    %4 = arith.mulf %1, %3 : vector<128x32xf32>
    %c0_3 = arith.constant 0 : index
    %c0_4 = arith.constant 0 : index
    %5 = vector.load %arg3[%c0_3, %c0_4] : memref<1x32xf32, #tpu.memory_space<vmem>>, vector<1x32xf32>
    %6 = vector.broadcast %5 : vector<1x32xf32> to vector<128x32xf32>
    %7 = arith.addf %4, %6 : vector<128x32xf32>
    %cst = arith.constant 0.000000e+00 : f32
    %8 = vector.broadcast %cst : f32 to vector<128x32xf32>
    %9 = arith.maximumf %7, %8 : vector<128x32xf32>
    %10 = arith.truncf %9 : vector<128x32xf32> to vector<128x32xbf16>
    %c0_5 = arith.constant 0 : index
    %c0_6 = arith.constant 0 : index
    %11 = vector.load %arg4[%c0_5, %c0_6] : memref<32x128xbf16, #tpu.memory_space<vmem>>, vector<32x128xbf16>
    %cst_7 = arith.constant dense<0.000000e+00> : vector<128x128xf32>
    %12 = tpu.matmul %10, %11, %cst_7 {dimension_numbers = #tpu.dot_dimension_numbers<[1], [0], [0], [1], [0, 0, 1, 1], [], []>} : vector<128x32xbf16>, vector<32x128xbf16>, vector<128x128xf32> -> vector<128x128xf32>
    %cst_8 = arith.constant dense<0.000000e+00> : vector<128xf32>
    %13 = vector.multi_reduction <add>, %12, %cst_8 [0] : vector<128x128xf32> to vector<128xf32>
    %14 = vector.shape_cast %13 : vector<128xf32> to vector<1x128xf32>
    %15 = arith.mulf %12, %12 : vector<128x128xf32>
    %cst_9 = arith.constant dense<0.000000e+00> : vector<128xf32>
    %16 = vector.multi_reduction <add>, %15, %cst_9 [0] : vector<128x128xf32> to vector<128xf32>
    %17 = vector.shape_cast %16 : vector<128xf32> to vector<1x128xf32>
    %18 = tpu.concatenate %14, %17 in 0 : vector<1x128xf32>, vector<1x128xf32> -> vector<2x128xf32>
    %19 = vector.shape_cast %18 : vector<2x128xf32> to vector<1x2x128xf32>
    %c0_10 = arith.constant 0 : index
    %c0_11 = arith.constant 0 : index
    %c0_12 = arith.constant 0 : index
    %20 = vector.load %arg6[%c0_10, %c0_11, %c0_12] : memref<1x2x128xf32, #tpu.memory_space<vmem>>, vector<1x2x128xf32>
    tpu.vector_store %arg6[%c0_10, %c0_11, %c0_12], %19 {strides = array<i32>} : memref<1x2x128xf32, #tpu.memory_space<vmem>>, vector<1x2x128xf32>,
    %21 = arith.truncf %12 : vector<128x128xf32> to vector<128x128xbf16>
    %c0_13 = arith.constant 0 : index
    %c0_14 = arith.constant 0 : index
    %22 = vector.load %arg5[%c0_13, %c0_14] : memref<128x128xbf16, #tpu.memory_space<vmem>>, vector<128x128xbf16>
    tpu.vector_store %arg5[%c0_13, %c0_14], %21 {strides = array<i32>} : memref<128x128xbf16, #tpu.memory_space<vmem>>, vector<128x128xbf16>,
    return
  }
  func.func @transform_0(%arg0: i32) -> (i32, i32) {
    %c0_i32 = arith.constant 0 : i32
    %c0_i32_0 = arith.constant 0 : i32
    return %arg0, %c0_i32 : i32, i32
  }
  func.func @transform_1(%arg0: i32) -> (i32, i32) {
    %c0_i32 = arith.constant 0 : i32
    %c0_i32_0 = arith.constant 0 : i32
    %c0_i32_1 = arith.constant 0 : i32
    return %c0_i32, %c0_i32_0 : i32, i32
  }
  func.func @transform_2(%arg0: i32) -> (i32, i32) {
    %c0_i32 = arith.constant 0 : i32
    %c0_i32_0 = arith.constant 0 : i32
    %c0_i32_1 = arith.constant 0 : i32
    return %c0_i32, %c0_i32_0 : i32, i32
  }
  func.func @transform_3(%arg0: i32) -> (i32, i32) {
    %c0_i32 = arith.constant 0 : i32
    %c0_i32_0 = arith.constant 0 : i32
    %c0_i32_1 = arith.constant 0 : i32
    return %c0_i32, %c0_i32_0 : i32, i32
  }
  func.func @transform_4(%arg0: i32) -> (i32, i32) {
    %c0_i32 = arith.constant 0 : i32
    %c0_i32_0 = arith.constant 0 : i32
    return %arg0, %c0_i32 : i32, i32
  }
  func.func @transform_5(%arg0: i32) -> (i32, i32, i32) {
    %c0_i32 = arith.constant 0 : i32
    %c0_i32_0 = arith.constant 0 : i32
    %c0_i32_1 = arith.constant 0 : i32
    return %arg0, %c0_i32, %c0_i32_0 : i32, i32, i32
  }
}

module attributes {stable_mosaic.version = 11 : i64} {
  func.func @_bn_add_relu_kernel(%arg0: i32, %arg1: memref<128x128xbf16, #tpu.memory_space<vmem>>, %arg2: memref<128x128xbf16, #tpu.memory_space<vmem>>, %arg3: memref<1x128xf32, #tpu.memory_space<vmem>>, %arg4: memref<1x128xf32, #tpu.memory_space<vmem>>, %arg5: memref<128x128xf32, #tpu.memory_space<vmem>>) attributes {dimension_semantics = [#tpu.dimension_semantics<parallel>], iteration_bounds = array<i64: 1>, scalar_prefetch = 0 : i64, scratch_operands = 0 : i64, tpu.core_type = #tpu.core_type<tc>, window_params = [{transform_indices = @transform_0, window_bounds = array<i64: 128, 128>}, {transform_indices = @transform_1, window_bounds = array<i64: 128, 128>}, {pipeline_mode = #tpu.pipeline_mode<synchronous>, transform_indices = @transform_2, window_bounds = array<i64: 1, 128>}, {pipeline_mode = #tpu.pipeline_mode<synchronous>, transform_indices = @transform_3, window_bounds = array<i64: 1, 128>}, {transform_indices = @transform_4, window_bounds = array<i64: 128, 128>}]} {
    %c0 = arith.constant 0 : index
    %c0_0 = arith.constant 0 : index
    %0 = vector.load %arg1[%c0, %c0_0] : memref<128x128xbf16, #tpu.memory_space<vmem>>, vector<128x128xbf16>
    %1 = arith.extf %0 : vector<128x128xbf16> to vector<128x128xf32>
    %c0_1 = arith.constant 0 : index
    %c0_2 = arith.constant 0 : index
    %2 = vector.load %arg2[%c0_1, %c0_2] : memref<128x128xbf16, #tpu.memory_space<vmem>>, vector<128x128xbf16>
    %3 = arith.extf %2 : vector<128x128xbf16> to vector<128x128xf32>
    %c0_3 = arith.constant 0 : index
    %c0_4 = arith.constant 0 : index
    %4 = vector.load %arg3[%c0_3, %c0_4] : memref<1x128xf32, #tpu.memory_space<vmem>>, vector<1x128xf32>
    %5 = vector.broadcast %4 : vector<1x128xf32> to vector<128x128xf32>
    %6 = arith.mulf %1, %5 : vector<128x128xf32>
    %c0_5 = arith.constant 0 : index
    %c0_6 = arith.constant 0 : index
    %7 = vector.load %arg4[%c0_5, %c0_6] : memref<1x128xf32, #tpu.memory_space<vmem>>, vector<1x128xf32>
    %8 = vector.broadcast %7 : vector<1x128xf32> to vector<128x128xf32>
    %9 = arith.addf %6, %8 : vector<128x128xf32>
    %10 = arith.addf %9, %3 : vector<128x128xf32>
    %cst = arith.constant 0.000000e+00 : f32
    %11 = vector.broadcast %cst : f32 to vector<128x128xf32>
    %12 = arith.maximumf %10, %11 : vector<128x128xf32>
    %c0_7 = arith.constant 0 : index
    %c0_8 = arith.constant 0 : index
    %13 = vector.load %arg5[%c0_7, %c0_8] : memref<128x128xf32, #tpu.memory_space<vmem>>, vector<128x128xf32>
    tpu.vector_store %arg5[%c0_7, %c0_8], %12 {strides = array<i32>} : memref<128x128xf32, #tpu.memory_space<vmem>>, vector<128x128xf32>,
    return
  }
  func.func @transform_0(%arg0: i32) -> (i32, i32) {
    %c0_i32 = arith.constant 0 : i32
    %c0_i32_0 = arith.constant 0 : i32
    return %arg0, %c0_i32 : i32, i32
  }
  func.func @transform_1(%arg0: i32) -> (i32, i32) {
    %c0_i32 = arith.constant 0 : i32
    %c0_i32_0 = arith.constant 0 : i32
    return %arg0, %c0_i32 : i32, i32
  }
  func.func @transform_2(%arg0: i32) -> (i32, i32) {
    %c0_i32 = arith.constant 0 : i32
    %c0_i32_0 = arith.constant 0 : i32
    %c0_i32_1 = arith.constant 0 : i32
    return %c0_i32, %c0_i32_0 : i32, i32
  }
  func.func @transform_3(%arg0: i32) -> (i32, i32) {
    %c0_i32 = arith.constant 0 : i32
    %c0_i32_0 = arith.constant 0 : i32
    %c0_i32_1 = arith.constant 0 : i32
    return %c0_i32, %c0_i32_0 : i32, i32
  }
  func.func @transform_4(%arg0: i32) -> (i32, i32) {
    %c0_i32 = arith.constant 0 : i32
    %c0_i32_0 = arith.constant 0 : i32
    return %arg0, %c0_i32 : i32, i32
  }
}

</mosaic_0001>

<bundles_post_ra>
// kernel: bottleneck_forward.4
= control target key start
LH: loop header
LB: loop body
LE: loop exit
PB: predicated region body
PF: predicated region fallthrough
CT: control target
= control target key end

     0   :  { %vm398_vm0 = vcmask 257024   ;;  %vm239_vm1 = vcmask 261120   ;;  %vm330_vm2 = vcmask 1040384   ;;  %vm332_vm3 = vcmask 254976   ;;  %s760_s1 = inlined_call_operand.vmem [shape: bf16[128,32], index: 1, kind: input, shape index: {}]   ;;  %s761_s0 = inlined_call_operand.vmem [shape: bf16[128,128], index: 0, kind: input, shape index: {}]   ;;  %s762_s2 = inlined_call_operand.vmem [shape: bf16[128,32], index: 2, kind: output, shape index: {0}]   ;;  %s763_s3 = inlined_call_operand.vmem [shape: f32[1,2,32], index: 3, kind: output, shape index: {1}]  }
   0x1   :  { %v535_v0 = vld [vmem:[%s760_s1] sm:$0xff]   ;;  %v536_v1 = vld [vmem:[%s760_s1 + $0x8] sm:$0xff]   ;;  %v537_v2 = vld [vmem:[%s760_s1 + $0x10] sm:$0xff]  }
   0x2   :  { %487 = vmatprep.subr.bf16.mxu0 %v535_v0  ;;  %519 = vmatprep.subr.bf16.mxu1 %v535_v0  ;;  %v538_v3 = vld [vmem:[%s760_s1 + $0x18] sm:$0xff]   ;;  %v543_v4 = vld [vmem:[%s761_s0] sm:$0xff]   ;;  %v540_v7 = vld [vmem:[%s760_s1 + $0x28] sm:$0xff]  }
   0x3   :  { %488 = vmatpush3.bf16.msra.mxu0 %v535_v0  ;;  %527 = vmatpush3.bf16.msra.mxu1 %v535_v0  ;;  %v539_v5 = vld [vmem:[%s760_s1 + $0x20] sm:$0xff]   ;;  %v541_v8 = vld [vmem:[%s760_s1 + $0x30] sm:$0xff]   ;;  %v542_v9 = vld [vmem:[%s760_s1 + $0x38] sm:$0xff]  }
   0x4   :  { %489 = vmatprep.subr.bf16.mxu0 %v536_v1  ;;  %520 = vmatprep.subr.bf16.mxu1 %v536_v1  ;;  %v547_v6 = vld [vmem:[%s761_s0 + $0x20] sm:$0xff]   ;;  %v544_v10 = vld [vmem:[%s761_s0 + $0x8] sm:$0xff]   ;;  %v545_v12 = vld [vmem:[%s761_s0 + $0x10] sm:$0xff]  }
   0x5   :  { %503 = vmatprep.mubr.bf16.mxu0 %v543_v4  ;;  %511 = vmatprep.mubr.bf16.mxu1 %v547_v6  ;;  %v548_v11 = vld [vmem:[%s761_s0 + $0x28] sm:$0xff]   ;;  %v549_v13 = vld [vmem:[%s761_s0 + $0x30] sm:$0xff]   ;;  %v546_v14 = vld [vmem:[%s761_s0 + $0x18] sm:$0xff]  }
   0x6   :  { %v550_v15 = vld [vmem:[%s761_s0 + $0x38] sm:$0xff]  }
   0x7   :  { %490 = vmatpush3.bf16.msra.mxu0 %v536_v1  ;;  %528 = vmatpush3.bf16.msra.mxu1 %v536_v1 }
   0x8   :  { %491 = vmatprep.subr.bf16.mxu0 %v537_v2  ;;  %521 = vmatprep.subr.bf16.mxu1 %v537_v2 }
   0xb   :  { %492 = vmatpush3.bf16.msra.mxu0 %v537_v2  ;;  %529 = vmatpush3.bf16.msra.mxu1 %v537_v2 }
   0xc   :  { %493 = vmatprep.subr.bf16.mxu0 %v538_v3  ;;  %522 = vmatprep.subr.bf16.mxu1 %v538_v3 }
   0xf   :  { %494 = vmatpush3.bf16.msra.mxu0 %v538_v3  ;;  %530 = vmatpush3.bf16.msra.mxu1 %v538_v3 }
  0x10   :  { %495 = vmatprep.subr.bf16.mxu0 %v539_v5  ;;  %523 = vmatprep.subr.bf16.mxu1 %v539_v5 }
  0x13   :  { %496 = vmatpush3.bf16.msra.mxu0 %v539_v5  ;;  %531 = vmatpush3.bf16.msra.mxu1 %v539_v5 }
  0x14   :  { %497 = vmatprep.subr.bf16.mxu0 %v540_v7  ;;  %524 = vmatprep.subr.bf16.mxu1 %v540_v7 }
  0x17   :  { %498 = vmatpush3.bf16.msra.mxu0 %v540_v7  ;;  %532 = vmatpush3.bf16.msra.mxu1 %v540_v7 }
  0x18   :  { %499 = vmatprep.subr.bf16.mxu0 %v541_v8  ;;  %525 = vmatprep.subr.bf16.mxu1 %v541_v8 }
  0x1b   :  { %500 = vmatpush3.bf16.msra.mxu0 %v541_v8  ;;  %533 = vmatpush3.bf16.msra.mxu1 %v541_v8 }
  0x1c   :  { %501 = vmatprep.subr.bf16.mxu0 %v542_v9  ;;  %526 = vmatprep.subr.bf16.mxu1 %v542_v9 }
  0x1f   :  { %502 = vmatpush3.bf16.msra.mxu0 %v542_v9  ;;  %534 = vmatpush3.bf16.msra.mxu1 %v542_v9 }
  0x22   :  { %504 = vmatmul.mubr.bf16.vlgmr.msra.gmra.mrb[0].mxu0 %v544_v10  ;;  %512 = vmatmul.mubr.bf16.vlgmr.msra.gmra.mrb[0].mxu1 %v548_v11 }
  0x23   :  { %507 = vmatprep.mubr.bf16.mxu0 %v545_v12  ;;  %515 = vmatprep.mubr.bf16.mxu1 %v549_v13 }
  0x2a   :  { %508 = vmatmul.mubr.bf16.gmra.mrb[4].mxu0 %v546_v14  ;;  %516 = vmatmul.mubr.bf16.gmra.mrb[4].mxu1 %v550_v15 }
  0xf5   :  { %v505_v16 = vpop.f32.mrb[0].mxu0  ;;  %v619_v17 = vpop.f32.mrb[0].mxu1 }
  0xf6   :  { %v457_v18 = vpack.c.bf16 %v505_v16, %v505_v16  ;;  %v176_v19 = vpop.f32.mrb[1].mxu0  ;;  %v621_v20 = vpop.f32.mrb[1].mxu1  ;;  %v279_v25 = vmul.f32 %v505_v16, %v505_v16  ;;  %v465_v35 = vpack.c.bf16 %v619_v17, %v619_v17  ;;  %v243_v36 = vsel %vm239_vm1, %v505_v16, 0.0 }
  0xf7   :  { %v277_v21 = vmul.f32 %v176_v19, %v176_v19  ;;  %v455_v22 = vpack.c.bf16 %v176_v19, %v176_v19  ;;  %v506_v23 = vpop.f32.mrb[2].mxu0  ;;  %v623_v24 = vpop.f32.mrb[2].mxu1  ;;  %v240_v29 = vsel %vm239_vm1, %v176_v19, 0.0  ;;  %v463_v39 = vpack.c.bf16 %v621_v20, %v621_v20 }
  0xf8   :  { %401 = vst.msk [vmem:[%s762_s2 + $0x8] sm:$0xf] %vm398_vm0, %v457_v18  ;;  %v458_v26 = vpack.c.bf16 %v506_v23, %v506_v23  ;;  %v179_v27 = vpop.f32.mrb[3].mxu0  ;;  %v629_v28 = vpop.f32.mrb[3].mxu1  ;;  %v280_v33 = vmul.f32 %v506_v23, %v506_v23  ;;  %409 = vst.msk [vmem:[%s762_s2 + $0x28] sm:$0xf] %vm398_vm0, %v465_v35  ;;  %v466_v44 = vpack.c.bf16 %v623_v24, %v623_v24 }
  0xf9   :  { %399 = vst.msk [vmem:[%s762_s2] sm:$0xf] %vm398_vm0, %v455_v22  ;;  %v241_v30 = vsel %vm239_vm1, %v179_v27, 0.0  ;;  %v278_v31 = vmul.f32 %v179_v27, %v179_v27  ;;  %v456_v32 = vpack.c.bf16 %v179_v27, %v179_v27  ;;  %v293_v37 = vsel %vm239_vm1, %v277_v21, 0.0  ;;  %407 = vst.msk [vmem:[%s762_s2 + $0x20] sm:$0xf] %vm398_vm0, %v463_v39 }
  0xfa   :  { %402 = vst.msk [vmem:[%s762_s2 + $0xc] sm:$0xf] %vm398_vm0, %v458_v26  ;;  %v242_v34 = vadd.f32 %v241_v30, %v240_v29  ;;  %v296_v42 = vsel %vm239_vm1, %v279_v25, 0.0  ;;  %v245_v46 = vsel %vm239_vm1, %v506_v23, 0.0  ;;  %v298_v47 = vsel %vm239_vm1, %v280_v33, 0.0 }
  0xfb   :  { %v294_v38 = vsel %vm239_vm1, %v278_v31, 0.0  ;;  %400 = vst.msk [vmem:[%s762_s2 + $0x4] sm:$0xf] %vm398_vm0, %v456_v32  ;;  %410 = vst.msk [vmem:[%s762_s2 + $0x2c] sm:$0xf] %vm398_vm0, %v466_v44  ;;  %v285_v6 = vmul.f32 %v621_v20, %v621_v20  ;;  %v464_v7 = vpack.c.bf16 %v629_v28, %v629_v28  ;;  %v255_v16 = vsel %vm239_vm1, %v621_v20, 0.0 }
  0xfc   :  { %v244_v40 = vadd.f32 %v243_v36, %v242_v34  ;;  %v295_v41 = vadd.f32 %v294_v38, %v293_v37  ;;  %v286_v26 = vmul.f32 %v629_v28, %v629_v28  ;;  %v287_v30 = vmul.f32 %v619_v17, %v619_v17 }
  0xfd   :  { %v509_v43 = vpop.f32.mrb[4].mxu0  ;;  %v663_v45 = vpop.f32.mrb[4].mxu1  ;;  %408 = vst.msk [vmem:[%s762_s2 + $0x24] sm:$0xf] %vm398_vm0, %v464_v7  ;;  %v308_v25 = vsel %vm239_vm1, %v285_v6, 0.0  ;;  %v257_v31 = vsel %vm239_vm1, %v629_v28, 0.0  ;;  %v288_v35 = vmul.f32 %v623_v24, %v623_v24 }
  0xfe   :  { %v297_v48 = vadd.f32 %v296_v42, %v295_v41  ;;  %v461_v49 = vpack.c.bf16 %v509_v43, %v509_v43  ;;  %v192_v50 = vpop.f32.mrb[5].mxu0  ;;  %v224_v51 = vpop.f32.mrb[5].mxu1  ;;  %v246_v52 = vadd.f32 %v245_v46, %v244_v40  ;;  %v283_v1 = vmul.f32 %v509_v43, %v509_v43 }
  0xff   :  { %v247_v53 = vsel %vm239_vm1, %v192_v50, 0.0  ;;  %v281_v54 = vmul.f32 %v192_v50, %v192_v50  ;;  %v459_v55 = vpack.c.bf16 %v192_v50, %v192_v50  ;;  %v510_v56 = vpop.f32.mrb[6].mxu0  ;;  %v672_v57 = vpop.f32.mrb[6].mxu1  ;;  %v251_v8 = vsel %vm239_vm1, %v509_v43, 0.0 }
 0x100   :  { %405 = vst.msk [vmem:[%s762_s2 + $0x18] sm:$0xf] %vm398_vm0, %v461_v49  ;;  %v299_v58 = vadd.f32 %v298_v47, %v297_v48  ;;  %v195_v59 = vpop.f32.mrb[7].mxu0  ;;  %v227_v60 = vpop.f32.mrb[7].mxu1  ;;  %v248_v61 = vadd.f32 %v247_v53, %v246_v52  ;;  %v462_v63 = vpack.c.bf16 %v510_v56, %v510_v56  ;;  %v284_v9 = vmul.f32 %v510_v56, %v510_v56 }
 0x101   :  { %v300_v62 = vsel %vm239_vm1, %v281_v54, 0.0  ;;  %403 = vst.msk [vmem:[%s762_s2 + $0x10] sm:$0xf] %vm398_vm0, %v459_v55  ;;  %v249_v0 = vsel %vm239_vm1, %v195_v59, 0.0  ;;  %v282_v3 = vmul.f32 %v195_v59, %v195_v59  ;;  %v460_v4 = vpack.c.bf16 %v195_v59, %v195_v59 }
 0x102   :  { %v301_v2 = vadd.f32 %v300_v62, %v299_v58  ;;  %406 = vst.msk [vmem:[%s762_s2 + $0x1c] sm:$0xf] %vm398_vm0, %v462_v63  ;;  %v250_v5 = vadd.f32 %v249_v0, %v248_v61  ;;  %v469_v11 = vpack.c.bf16 %v663_v45, %v663_v45  ;;  %v304_v14 = vsel %vm239_vm1, %v283_v1, 0.0 }
 0x103   :  { %v302_v10 = vsel %vm239_vm1, %v282_v3, 0.0  ;;  %404 = vst.msk [vmem:[%s762_s2 + $0x14] sm:$0xf] %vm398_vm0, %v460_v4  ;;  %v253_v15 = vsel %vm239_vm1, %v510_v56, 0.0  ;;  %v467_v18 = vpack.c.bf16 %v224_v51, %v224_v51  ;;  %v470_v22 = vpack.c.bf16 %v672_v57, %v672_v57 }
 0x104   :  { %v252_v12 = vadd.f32 %v251_v8, %v250_v5  ;;  %v303_v13 = vadd.f32 %v302_v10, %v301_v2  ;;  %413 = vst.msk [vmem:[%s762_s2 + $0x38] sm:$0xf] %vm398_vm0, %v469_v11  ;;  %v306_v23 = vsel %vm239_vm1, %v284_v9, 0.0  ;;  %v468_v20 = vpack.c.bf16 %v227_v60, %v227_v60 }
 0x105   :  { %411 = vst.msk [vmem:[%s762_s2 + $0x30] sm:$0xf] %vm398_vm0, %v467_v18  ;;  %414 = vst.msk [vmem:[%s762_s2 + $0x3c] sm:$0xf] %vm398_vm0, %v470_v22  ;;  %v259_v34 = vsel %vm239_vm1, %v619_v17, 0.0  ;;  %v310_v36 = vsel %vm239_vm1, %v286_v26, 0.0  ;;  %v289_v37 = vmul.f32 %v224_v51, %v224_v51  ;;  %v290_v46 = vmul.f32 %v227_v60, %v227_v60 }
 0x106   :  { %v305_v19 = vadd.f32 %v304_v14, %v303_v13  ;;  %v254_v21 = vadd.f32 %v253_v15, %v252_v12  ;;  %412 = vst.msk [vmem:[%s762_s2 + $0x34] sm:$0xf] %vm398_vm0, %v468_v20  ;;  %v312_v28 = vsel %vm239_vm1, %v287_v30, 0.0  ;;  %v261_v40 = vsel %vm239_vm1, %v623_v24, 0.0 }
 0x107   :  { %v263_v41 = vsel %vm239_vm1, %v224_v51, 0.0  ;;  %v314_v44 = vsel %vm239_vm1, %v288_v35, 0.0  ;;  %v316_v17 = vsel %vm239_vm1, %v289_v37, 0.0  ;;  %v291_v49 = vmul.f32 %v663_v45, %v663_v45 }
 0x108   :  { %v256_v27 = vadd.f32 %v255_v16, %v254_v21  ;;  %v307_v29 = vadd.f32 %v306_v23, %v305_v19  ;;  %v265_v50 = vsel %vm239_vm1, %v227_v60, 0.0  ;;  %v267_v24 = vsel %vm239_vm1, %v663_v45, 0.0 }
 0x109   :  { %v292_v51 = vmul.f32 %v672_v57, %v672_v57  ;;  %v318_v54 = vsel %vm239_vm1, %v290_v46, 0.0  ;;  %v320_v58 = vsel %vm239_vm1, %v291_v49, 0.0  ;;  %v269_v59 = vsel %vm239_vm1, %v672_v57, 0.0 }
 0x10a   :  { %v309_v32 = vadd.f32 %v308_v25, %v307_v29  ;;  %v258_v33 = vadd.f32 %v257_v31, %v256_v27 }
 0x10b   :  { %v322_v60 = vsel %vm239_vm1, %v292_v51, 0.0 }
 0x10c   :  { %v260_v38 = vadd.f32 %v259_v34, %v258_v33  ;;  %v311_v39 = vadd.f32 %v310_v36, %v309_v32 }
 0x10e   :  { %v313_v42 = vadd.f32 %v312_v28, %v311_v39  ;;  %v262_v43 = vadd.f32 %v261_v40, %v260_v38 }
 0x110   :  { %v264_v47 = vadd.f32 %v263_v41, %v262_v43  ;;  %v315_v48 = vadd.f32 %v314_v44, %v313_v42 }
 0x112   :  { %v317_v52 = vadd.f32 %v316_v17, %v315_v48  ;;  %v266_v53 = vadd.f32 %v265_v50, %v264_v47 }
 0x114   :  { %v268_v55 = vadd.f32 %v267_v24, %v266_v53  ;;  %v319_v56 = vadd.f32 %v318_v54, %v317_v52 }
 0x116   :  { %v270_v61 = vadd.f32 %v269_v59, %v268_v55  ;;  %v321_v62 = vadd.f32 %v320_v58, %v319_v56 }
 0x118   :  { %v271_v63 = vrot.slane %v270_v61, 4  ;;  %v323_v0 = vadd.f32 %v322_v60, %v321_v62 }
 0x11a   :  { %v272_v1 = vadd.f32 %v271_v63, %v270_v61  ;;  %v324_v45 = vrot.slane %v323_v0, 4 }
 0x11c   :  { %v273_v2 = vrot.slane %v272_v1, 2  ;;  %v325_v3 = vadd.f32 %v324_v45, %v323_v0 }
 0x11e   :  { %v274_v4 = vadd.f32 %v273_v2, %v272_v1  ;;  %v326_v5 = vrot.slane %v325_v3, 2 }
 0x120   :  { %v275_v6 = vrot.slane %v274_v4, 1  ;;  %v327_v7 = vadd.f32 %v326_v5, %v325_v3 }
 0x122   :  { %v328_v8 = vrot.slane %v327_v7, 1  ;;  %v276_v9 = vadd.f32 %v275_v6, %v274_v4 }
 0x124   :  { %v329_v10 = vadd.f32 %v328_v8, %v327_v7 }
 0x126   :  { %v331_v57 = vsel %vm330_vm2, %v276_v9, %v329_v10 }
 0x127   :  { %333 = vst.msk [vmem:[%s763_s3] sm:$0x3] %vm332_vm3, %v331_v57 }

// kernel: bottleneck_forward.6
= control target key start
LH: loop header
LB: loop body
LE: loop exit
PB: predicated region body
PF: predicated region fallthrough
CT: control target
= control target key end

     0   :  { %vm138_vm0 = vcmask 261120   ;;  %vm318_vm1 = vcmask 1040384   ;;  %s712_s3 = inlined_call_operand.vmem [shape: bf16[32,128], index: 3, kind: input, shape index: {}]   ;;  %s713_s0 = inlined_call_operand.vmem [shape: bf16[128,32], index: 0, kind: input, shape index: {}]   ;;  %s714_s1 = inlined_call_operand.vmem [shape: f32[1,32], index: 1, kind: input, shape index: {}]   ;;  %s715_s2 = inlined_call_operand.vmem [shape: f32[1,32], index: 2, kind: input, shape index: {}]   ;;  %s716_s4 = inlined_call_operand.vmem [shape: bf16[128,128], index: 4, kind: output, shape index: {0}]   ;;  %s717_s5 = inlined_call_operand.vmem [shape: f32[1,2,128], index: 5, kind: output, shape index: {1}]  }
   0x1   :  { %v573_v0 = vld [vmem:[%s712_s3] sm:$0xff]   ;;  %v574_v1 = vld [vmem:[%s712_s3 + $0x8] sm:$0xff]   ;;  %v526_v7 = vld [vmem:[%s713_s0 + $0x10] sm:$0xff]  }
   0x2   :  { %549 = vmatprep.subr.bf16.mxu0 %v573_v0  ;;  %v454_v2 = vld [vmem:[%s713_s0] sm:$0xff]   ;;  %569 = vmatprep.subr.bf16.mxu1 %v573_v0  ;;  %v525_v6 = vld [vmem:[%s713_s0 + $0x8] sm:$0xff]   ;;  %v527_v8 = vld [vmem:[%s713_s0 + $0x18] sm:$0xff]   ;;  %v463_v12 = vunpack.c.l.bf16 %v526_v7  ;;  %v464_v13 = vunpack.c.h.bf16 %v526_v7 }
   0x3   :  { %v617_v3 = vld [vmem:[%s714_s1] ss:$0 sm:$0xff]  ;;  %550 = vmatpush3.bf16.msra.mxu0 %v573_v0  ;;  %v455_v4 = vunpack.c.l.bf16 %v454_v2  ;;  %v456_v5 = vunpack.c.h.bf16 %v454_v2  ;;  %571 = vmatpush3.bf16.msra.mxu1 %v573_v0  ;;  %v459_v10 = vunpack.c.l.bf16 %v525_v6  ;;  %v460_v11 = vunpack.c.h.bf16 %v525_v6  ;;  %v529_v35 = vld [vmem:[%s713_s0 + $0x28] sm:$0xff]   ;;  %v530_v40 = vld [vmem:[%s713_s0 + $0x30] sm:$0xff]  }
   0x4   :  { %551 = vmatprep.subr.bf16.mxu0 %v574_v1  ;;  %v631_v9 = vld [vmem:[%s715_s2] ss:$0 sm:$0xff]  ;;  %570 = vmatprep.subr.bf16.mxu1 %v574_v1  ;;  %v467_v16 = vunpack.c.l.bf16 %v527_v8  ;;  %v468_v17 = vunpack.c.h.bf16 %v527_v8  ;;  %v63_v20 = vmul.f32 %v463_v12, %v617_v3  ;;  %v64_v21 = vmul.f32 %v464_v13, %v617_v3  ;;  %v531_v44 = vld [vmem:[%s713_s0 + $0x38] sm:$0xff]  }
   0x5   :  { %v59_v14 = vmul.f32 %v455_v4, %v617_v3  ;;  %v60_v15 = vmul.f32 %v456_v5, %v617_v3  ;;  %v61_v18 = vmul.f32 %v459_v10, %v617_v3  ;;  %v62_v19 = vmul.f32 %v460_v11, %v617_v3  ;;  %v528_v30 = vld [vmem:[%s713_s0 + $0x20] sm:$0xff]  }
   0x6   :  { %v65_v24 = vmul.f32 %v467_v16, %v617_v3  ;;  %v66_v25 = vmul.f32 %v468_v17, %v617_v3  ;;  %v86_v28 = vadd.f32 %v631_v9, %v63_v20  ;;  %v87_v29 = vadd.f32 %v631_v9, %v64_v21 }
   0x7   :  { %552 = vmatpush3.bf16.msra.mxu0 %v574_v1  ;;  %v82_v22 = vadd.f32 %v631_v9, %v59_v14  ;;  %v83_v23 = vadd.f32 %v631_v9, %v60_v15  ;;  %v84_v26 = vadd.f32 %v631_v9, %v61_v18  ;;  %v85_v27 = vadd.f32 %v631_v9, %v62_v19 }
   0x8   :  { %572 = vmatpush3.bf16.msra.mxu1 %v574_v1  ;;  %v88_v33 = vadd.f32 %v631_v9, %v65_v24  ;;  %v89_v34 = vadd.f32 %v631_v9, %v66_v25  ;;  %v102_v38 = vmax.f32 %v86_v28, 0.0  ;;  %v103_v39 = vmax.f32 %v87_v29, 0.0 }
   0x9   :  { %v98_v31 = vmax.f32 %v82_v22, 0.0  ;;  %v99_v32 = vmax.f32 %v83_v23, 0.0  ;;  %v100_v36 = vmax.f32 %v84_v26, 0.0  ;;  %v101_v37 = vmax.f32 %v85_v27, 0.0 }
   0xa   :  { %v104_v42 = vmax.f32 %v88_v33, 0.0  ;;  %v471_v43 = vunpack.c.l.bf16 %v528_v30  ;;  %v116_v46 = vpack.c.bf16 %v103_v39, %v102_v38  ;;  %v472_v47 = vunpack.c.h.bf16 %v528_v30 }
   0xb   :  { %v114_v41 = vpack.c.bf16 %v99_v32, %v98_v31  ;;  %v115_v45 = vpack.c.bf16 %v101_v37, %v100_v36  ;;  %v475_v48 = vunpack.c.l.bf16 %v529_v35  ;;  %v105_v49 = vmax.f32 %v89_v34, 0.0 }
   0xc   :  { %v67_v50 = vmul.f32 %v471_v43, %v617_v3  ;;  %v476_v51 = vunpack.c.h.bf16 %v529_v35  ;;  %v479_v52 = vunpack.c.l.bf16 %v530_v40  ;;  %v68_v53 = vmul.f32 %v472_v47, %v617_v3 }
   0xd   :  { %553 = vmatprep.mubr.msk.bf16.mxu0 %vm138_vm0, %v114_v41  ;;  %v69_v54 = vmul.f32 %v475_v48, %v617_v3  ;;  %v480_v55 = vunpack.c.h.bf16 %v530_v40  ;;  %v483_v56 = vunpack.c.l.bf16 %v531_v44  ;;  %v484_v60 = vunpack.c.h.bf16 %v531_v44 }
   0xe   :  { %554 = vmatmul.mubr.msk.bf16.vlgmr.msra.gmra.mrb[0].mxu0 %vm138_vm0, %v115_v45  ;;  %v90_v57 = vadd.f32 %v631_v9, %v67_v50  ;;  %v70_v58 = vmul.f32 %v476_v51, %v617_v3  ;;  %v71_v59 = vmul.f32 %v479_v52, %v617_v3  ;;  %v91_v61 = vadd.f32 %v631_v9, %v68_v53 }
   0xf   :  { %557 = vmatprep.mubr.msk.bf16.mxu0 %vm138_vm0, %v116_v46  ;;  %v92_v62 = vadd.f32 %v631_v9, %v69_v54  ;;  %v72_v63 = vmul.f32 %v480_v55, %v617_v3  ;;  %v73_v0 = vmul.f32 %v483_v56, %v617_v3  ;;  %v74_v5 = vmul.f32 %v484_v60, %v617_v3 }
  0x10   :  { %v106_v1 = vmax.f32 %v90_v57, 0.0  ;;  %v93_v2 = vadd.f32 %v631_v9, %v70_v58  ;;  %v94_v4 = vadd.f32 %v631_v9, %v71_v59  ;;  %v117_v6 = vpack.c.bf16 %v105_v49, %v104_v42 }
  0x11   :  { %v107_v7 = vmax.f32 %v91_v61, 0.0  ;;  %v108_v8 = vmax.f32 %v92_v62, 0.0  ;;  %v95_v10 = vadd.f32 %v631_v9, %v72_v63  ;;  %v96_v13 = vadd.f32 %v631_v9, %v73_v0 }
  0x12   :  { %v109_v11 = vmax.f32 %v93_v2, 0.0  ;;  %v110_v12 = vmax.f32 %v94_v4, 0.0  ;;  %v97_v14 = vadd.f32 %v631_v9, %v74_v5 }
  0x13   :  { %v118_v15 = vpack.c.bf16 %v107_v7, %v106_v1  ;;  %v111_v16 = vmax.f32 %v95_v10, 0.0  ;;  %v112_v3 = vmax.f32 %v96_v13, 0.0 }
  0x14   :  { %v119_v17 = vpack.c.bf16 %v109_v11, %v108_v8  ;;  %v113_v19 = vmax.f32 %v97_v14, 0.0 }
  0x15   :  { %561 = vmatprep.mubr.msk.bf16.mxu1 %vm138_vm0, %v118_v15  ;;  %v120_v18 = vpack.c.bf16 %v111_v16, %v110_v12 }
  0x16   :  { %558 = vmatmul.mubr.msk.bf16.gmra.mrb[4].mxu0 %vm138_vm0, %v117_v6  ;;  %562 = vmatmul.mubr.msk.bf16.vlgmr.msra.gmra.mrb[0].mxu1 %vm138_vm0, %v119_v17  ;;  %v121_v20 = vpack.c.bf16 %v113_v19, %v112_v3 }
  0x17   :  { %565 = vmatprep.mubr.msk.bf16.mxu1 %vm138_vm0, %v120_v18 }
  0x1e   :  { %566 = vmatmul.mubr.msk.bf16.gmra.mrb[4].mxu1 %vm138_vm0, %v121_v20 }
  0xe1   :  { %v555_v21 = vpop.f32.mrb[0].mxu0 }
  0xe2   :  { %v197_v22 = vpop.f32.mrb[1].mxu0  ;;  %v283_v29 = vmul.f32 %v555_v21, %v555_v21 }
  0xe3   :  { %v556_v9 = vpop.f32.mrb[2].mxu0  ;;  %v281_v25 = vmul.f32 %v197_v22, %v197_v22 }
  0xe4   :  { %v493_v23 = vpack.c.bf16 %v556_v9, %v555_v21  ;;  %v200_v24 = vpop.f32.mrb[3].mxu0  ;;  %v284_v32 = vmul.f32 %v556_v9, %v556_v9 }
  0xe5   :  { %v260_v26 = vadd.f32 %v200_v24, %v197_v22  ;;  %v282_v27 = vmul.f32 %v200_v24, %v200_v24  ;;  %v488_v28 = vpack.c.bf16 %v200_v24, %v197_v22 }
  0xe6   :  { %532 = vst [vmem:[%s716_s4 + $0x8] sm:$0xff] %v493_v23  }
  0xe7   :  { %v261_v30 = vadd.f32 %v555_v21, %v260_v26  ;;  %v297_v31 = vadd.f32 %v282_v27, %v281_v25  ;;  %489 = vst [vmem:[%s716_s4] sm:$0xff] %v488_v28  }
  0xe9   :  { %v298_v33 = vadd.f32 %v297_v31, %v283_v29  ;;  %v559_v34 = vpop.f32.mrb[4].mxu0  ;;  %v262_v35 = vadd.f32 %v556_v9, %v261_v30  ;;  %v563_v37 = vpop.f32.mrb[0].mxu1 }
  0xea   :  { %v213_v36 = vpop.f32.mrb[5].mxu0  ;;  %v229_v42 = vpop.f32.mrb[1].mxu1  ;;  %v287_v53 = vmul.f32 %v559_v34, %v559_v34  ;;  %v291_v8 = vmul.f32 %v563_v37, %v563_v37 }
  0xeb   :  { %v263_v38 = vadd.f32 %v262_v35, %v213_v36  ;;  %v285_v39 = vmul.f32 %v213_v36, %v213_v36  ;;  %v299_v40 = vadd.f32 %v298_v33, %v284_v32  ;;  %v560_v41 = vpop.f32.mrb[6].mxu0  ;;  %v564_v45 = vpop.f32.mrb[2].mxu1  ;;  %v289_v59 = vmul.f32 %v229_v42, %v229_v42 }
  0xec   :  { %v503_v43 = vpack.c.bf16 %v560_v41, %v559_v34  ;;  %v216_v44 = vpop.f32.mrb[7].mxu0  ;;  %v232_v50 = vpop.f32.mrb[3].mxu1  ;;  %v513_v51 = vpack.c.bf16 %v564_v45, %v563_v37  ;;  %v288_v56 = vmul.f32 %v560_v41, %v560_v41  ;;  %v292_v12 = vmul.f32 %v564_v45, %v564_v45 }
  0xed   :  { %v300_v46 = vadd.f32 %v299_v40, %v285_v39  ;;  %v264_v47 = vadd.f32 %v263_v38, %v216_v44  ;;  %v286_v48 = vmul.f32 %v216_v44, %v216_v44  ;;  %v498_v49 = vpack.c.bf16 %v216_v44, %v213_v36 }
  0xee   :  { %534 = vst [vmem:[%s716_s4 + $0x18] sm:$0xff] %v503_v43   ;;  %v508_v52 = vpack.c.bf16 %v232_v50, %v229_v42  ;;  %536 = vst [vmem:[%s716_s4 + $0x28] sm:$0xff] %v513_v51   ;;  %v290_v4 = vmul.f32 %v232_v50, %v232_v50 }
  0xef   :  { %v265_v54 = vadd.f32 %v559_v34, %v264_v47  ;;  %v301_v55 = vadd.f32 %v300_v46, %v286_v48  ;;  %533 = vst [vmem:[%s716_s4 + $0x10] sm:$0xff] %v498_v49  }
  0xf0   :  { %535 = vst [vmem:[%s716_s4 + $0x20] sm:$0xff] %v508_v52  }
  0xf1   :  { %v302_v57 = vadd.f32 %v301_v55, %v287_v53  ;;  %v266_v58 = vadd.f32 %v560_v41, %v265_v54  ;;  %v567_v60 = vpop.f32.mrb[4].mxu1 }
  0xf2   :  { %v245_v63 = vpop.f32.mrb[5].mxu1  ;;  %v295_v20 = vmul.f32 %v567_v60, %v567_v60 }
  0xf3   :  { %v267_v61 = vadd.f32 %v266_v58, %v229_v42  ;;  %v303_v62 = vadd.f32 %v302_v57, %v288_v56  ;;  %v568_v0 = vpop.f32.mrb[6].mxu1  ;;  %v293_v15 = vmul.f32 %v245_v63, %v245_v63 }
  0xf4   :  { %v523_v5 = vpack.c.bf16 %v568_v0, %v567_v60  ;;  %v248_v6 = vpop.f32.mrb[7].mxu1  ;;  %v296_v9 = vmul.f32 %v568_v0, %v568_v0 }
  0xf5   :  { %v304_v1 = vadd.f32 %v303_v62, %v289_v59  ;;  %v268_v2 = vadd.f32 %v267_v61, %v232_v50  ;;  %v518_v7 = vpack.c.bf16 %v248_v6, %v245_v63  ;;  %v294_v19 = vmul.f32 %v248_v6, %v248_v6 }
  0xf6   :  { %538 = vst [vmem:[%s716_s4 + $0x38] sm:$0xff] %v523_v5  }
  0xf7   :  { %v269_v10 = vadd.f32 %v563_v37, %v268_v2  ;;  %v305_v11 = vadd.f32 %v304_v1, %v290_v4  ;;  %537 = vst [vmem:[%s716_s4 + $0x30] sm:$0xff] %v518_v7  }
  0xf9   :  { %v306_v13 = vadd.f32 %v305_v11, %v291_v8  ;;  %v270_v14 = vadd.f32 %v564_v45, %v269_v10 }
  0xfb   :  { %v271_v16 = vadd.f32 %v270_v14, %v245_v63  ;;  %v307_v17 = vadd.f32 %v306_v13, %v292_v12 }
  0xfd   :  { %v308_v18 = vadd.f32 %v307_v17, %v293_v15  ;;  %v272_v3 = vadd.f32 %v271_v16, %v248_v6 }
  0xff   :  { %v273_v21 = vadd.f32 %v567_v60, %v272_v3  ;;  %v309_v22 = vadd.f32 %v308_v18, %v294_v19 }
 0x101   :  { %v274_v23 = vadd.f32 %v568_v0, %v273_v21  ;;  %v310_v24 = vadd.f32 %v309_v22, %v295_v20 }
 0x103   :  { %v275_v25 = vrot.slane %v274_v23, 4  ;;  %v311_v26 = vadd.f32 %v310_v24, %v296_v9 }
 0x105   :  { %v276_v27 = vadd.f32 %v275_v25, %v274_v23  ;;  %v312_v28 = vrot.slane %v311_v26, 4 }
 0x107   :  { %v277_v29 = vrot.slane %v276_v27, 2  ;;  %v313_v30 = vadd.f32 %v312_v28, %v311_v26 }
 0x109   :  { %v278_v31 = vadd.f32 %v277_v29, %v276_v27  ;;  %v314_v32 = vrot.slane %v313_v30, 2 }
 0x10b   :  { %v279_v33 = vrot.slane %v278_v31, 1  ;;  %v315_v34 = vadd.f32 %v314_v32, %v313_v30 }
 0x10d   :  { %v316_v35 = vrot.slane %v315_v34, 1  ;;  %v280_v36 = vadd.f32 %v279_v33, %v278_v31 }
 0x10f   :  { %v317_v37 = vadd.f32 %v316_v35, %v315_v34 }
 0x111   :  { %v319_v38 = vsel %vm318_vm1, %v280_v36, %v317_v37 }
 0x112   :  { %320 = vst [vmem:[%s717_s5] sm:$0x3] %v319_v38 }

// kernel: bottleneck_forward.5
= control target key start
LH: loop header
LB: loop body
LE: loop exit
PB: predicated region body
PF: predicated region fallthrough
CT: control target
= control target key end

     0   :  { %s1369_s18 = smov 0   ;;  %s1371_s19 = smov 0   ;;  %s1719_s0 = inlined_call_operand.vmem [shape: bf16[128,32], index: 0, kind: input, shape index: {}]   ;;  %s1720_s1 = inlined_call_operand.vmem [shape: f32[1,32], index: 1, kind: input, shape index: {}]   ;;  %s1721_s2 = inlined_call_operand.vmem [shape: f32[1,32], index: 2, kind: input, shape index: {}]   ;;  %s1722_s3 = inlined_call_operand.vmem [shape: bf16[288,32], index: 3, kind: input, shape index: {}]   ;;  %s1723_s4 = inlined_call_operand.vmem [shape: bf16[128,32], index: 4, kind: output, shape index: {0}]   ;;  %s1724_s5 = inlined_call_operand.vmem [shape: f32[4,2,32], index: 5, kind: output, shape index: {1}]  }
   0x1   :  { %s1373_s20 = smov 0   ;;  %s1375_s21 = smov 0  }
   0x2   :  { %s1377_s22 = smov 0  }
   0x3 LB: > { %s25_s23 = sadd.s32 1, %s1326_s20  ;;  %s28_s24 = sadd.s32 1, %s1330_s21  ;;  %s1334_s22 = sphi %s1377_s22, %s16_s22   ;;  %s1330_s21 = sphi %s1375_s21, %s1729_s21   ;;  %s1326_s20 = sphi %s1373_s20, %s1728_s20   ;;  %s1322_s19 = sphi %s1371_s19, %s1727_s19   ;;  %s1318_s18 = sphi %s1369_s18, %s1726_s18  }
   0x4   : > { %p26_p0 = scmp.ge.s32.totalorder %s25_s23, 2  ;;  %p1069_p1 = scmp.ge.s32.totalorder %s1334_s22, 1 }
   0x5   : > { %p211_p2 = scmp.lt.s32.totalorder %s1334_s22, 5 }
   0x6   : > { %s1731_s23 = smov (%p26_p0, %s25_s23), 0  ;;  %s1733_s24 = smov (!%p26_p0, %s28_s24), %s1330_s21 }
   0x7   : > { %p212_p3 = pnand %p1069_p1, %p211_p2  ;;  %p30_p4 = scmp.ge.s32.totalorder %s1733_s24, 2 }
   0x8   : > { %s1070_s25 = sshll.u32 (!%p212_p3), %s1322_s19, 3  ;;  %s1405_s26 = sshll.u32 (!%p212_p3), %s1318_s18, 5  ;;  %v1278_v0 = vld [vmem:[%s1722_s3] sm:$0xff] (!%p212_p3)   ;;  %v1279_v1 = vld [vmem:[%s1722_s3 + $0x8] sm:$0xff] (!%p212_p3)   ;;  %v1280_v3 = vld [vmem:[%s1722_s3 + $0x10] sm:$0xff] (!%p212_p3)   ;;  %v351_v6 = vlaneseq (!%p212_p3)  ;;  %vm513_vm3 = vcmask (!%p212_p3), 261120  }
   0x9   : > { %s1735_s24 = smov (%p30_p4, %s1733_s24), 0  ;;  %215 = sbr.rel (%p212_p3) target bundleno = 429 (0x1ad), region = 36 }
   0xa   : > { %p248_p5 = scmp.lt.s32.totalorder (!%p212_p3), %s1070_s25, 15  ;;  %s275_s27 = sshra.s32 (!%p212_p3), %s1405_s26, 3  ;;  %1175 = vmatprep.subr.bf16.mxu0 (!%p212_p3), %v1278_v0  ;;  %v1423_v2 = vld [vmem:[%s1720_s1] ss:$0 sm:$0xff] (!%p212_p3)  ;;  %v1281_v12 = vld [vmem:[%s1722_s3 + $0x18] sm:$0xff] (!%p212_p3)   ;;  %v1451_v17 = vshrl.u32 (!%p212_p3), %v351_v6, 7 }
   0xb   : > { %s1078_s7 = sshll.u32 (!%p212_p3), %s275_s27, 2  ;;  %s1081_s8 = sadd.s32 (!%p212_p3), 4294967288, %s1405_s26  ;;  %1176 = vmatpush3.bf16.msra.mxu0 (!%p212_p3), %v1278_v0  ;;  %v1434_v7 = vld [vmem:[%s1721_s2] ss:$0 sm:$0xff] (!%p212_p3)  ;;  %v1283_v36 = vld [vmem:[%s1722_s3 + $0x28] sm:$0xff] (!%p212_p3)   ;;  %v1285_v51 = vld [vmem:[%s1722_s3 + $0x30] sm:$0xff] (!%p212_p3)  }
   0xc   : > { %p312_p6 = scmp.gt.s32.totalorder (!%p212_p3), %s1081_s8, 0  ;;  %p326_p7 = scmp.gt.s32.totalorder (!%p212_p3), %s1318_s18, 0  ;;  %1177 = vmatprep.subr.bf16.mxu0 (!%p212_p3), %v1279_v1  ;;  %v1282_v24 = vld [vmem:[%s1722_s3 + $0x20] sm:$0xff] (!%p212_p3)   ;;  %vm353_vm0 = vcmp.lt.s32.totalorder (!%p212_p3), %v1451_v17, 1  ;;  %vm366_vm1 = vcmp.lt.s32.totalorder (!%p212_p3), %v1451_v17, 7  ;;  %1159 = vmatprep.subr.bf16.mxu1 (!%p212_p3), %v1285_v51  ;;  %v1287_v56 = vld [vmem:[%s1722_s3 + $0x38] sm:$0xff] (!%p212_p3)  }
   0xd   : > { %p340_p9 = scmp.lt.s32.totalorder (!%p212_p3), %s1318_s18, 1  ;;  %s1336_s28 = smov (!%p212_p3), 32   ;;  %v1507_v45 = vld [vmem:[%s1722_s3 + $0x60] sm:$0xff] (!%p212_p3)   ;;  %1160 = vmatpush3.bf16.msra.mxu1 (!%p212_p3), %v1285_v51  ;;  %v1293_v6 = vld [vmem:[%s1722_s3 + $0x50] sm:$0xff] (!%p212_p3)   ;;  %vm518_vm5 = vcmask (!%p212_p3), 523264   ;;  %vm604_vm8 = vcmask (!%p212_p3), 785408  }
   0xe   : > { %s1337_s30 = smov (!%p212_p3), 64   ;;  %1161 = vmatprep.subr.bf16.mxu1 (!%p212_p3), %v1287_v56  ;;  %v1289_v62 = vld [vmem:[%s1722_s3 + $0x40] sm:$0xff] (!%p212_p3)   ;;  %vm939_vm13 = vcmask (!%p212_p3), 257024   ;;  %vm919_vm14 = vcmask (!%p212_p3), 1040384   ;;  %vm921_vm15 = vcmask (!%p212_p3), 254976  }
   0xf   : > { %1178 = vmatpush3.bf16.msra.mxu0 (!%p212_p3), %v1279_v1 }
  0x10   : > { %s1737_s25 = smov (!%p248_p5, %s1070_s25), 15  ;;  %s1739_s8 = smov (!%p312_p6, %s1081_s8), 0  ;;  %1179 = vmatprep.subr.bf16.mxu0 %v1280_v3 }
  0x11   : > { %s1071_s9 = sshll.u32 %s1737_s25, 2  ;;  %s314_s25 = sadd.s32 32, %s1405_s26  ;;  %1162 = vmatpush3.bf16.msra.mxu1 %v1287_v56 }
  0x12   : > { %s1418_s12 = scalar_lea.vmem %s1719_s0, %s1071_s9  ;;  %s317_s26 = sshra.s32 %s1739_s8, 3  ;;  %1163 = vmatprep.subr.bf16.mxu1 %v1289_v62 }
  0x13   : > { %s278_s17 = scalar_lea.vmem %s1418_s12, %s1078_s7  ;;  %p1440_p8 = scmp.lt.s32.totalorder %s314_s25, 56  ;;  %1180 = vmatpush3.bf16.msra.mxu0 %v1280_v3  ;;  %v1291_v3 = vld [vmem:[%s1722_s3 + $0x48] sm:$0xff]  }
  0x14   : > { %v1127_v4 = vld [vmem:[%s278_s17] sm:$0xff]   ;;  %v1134_v5 = vld [vmem:[%s278_s17 + $0x8] sm:$0xff]   ;;  %s1438_s29 = scalar_select %p326_p7, 1, 0  ;;  %1181 = vmatprep.subr.bf16.mxu0 %v1281_v12 }
  0x15   : > { %v1129_v8 = vunpack.c.h.bf16 %v1127_v4  ;;  %v1132_v9 = vunpack.c.l.bf16 %v1134_v5  ;;  %v1128_v10 = vunpack.c.l.bf16 %v1127_v4  ;;  %v1133_v11 = vunpack.c.h.bf16 %v1134_v5  ;;  %s1082_s9 = sshll.u32 %s317_s26, 2  ;;  %s1741_s25 = smov (!%p1440_p8, %s314_s25), 56  ;;  %1164 = vmatpush3.bf16.msra.mxu1 %v1289_v62 }
  0x16   : > { %s320_s8 = scalar_lea.vmem %s1418_s12, %s1082_s9  ;;  %s328_s14 = scvt.s32.f32 %s1438_s29  ;;  %1165 = vmatprep.subr.bf16.mxu1 %v1291_v3 }
  0x17   : > { %v294_v13 = vmul.f32 %v1129_v8, %v1423_v2  ;;  %v295_v14 = vmul.f32 %v1132_v9, %v1423_v2  ;;  %v293_v15 = vmul.f32 %v1128_v10, %v1423_v2  ;;  %v296_v16 = vmul.f32 %v1133_v11, %v1423_v2  ;;  %v321_v22 = vld [vmem:[%s320_s8] sm:$0xf]  ;;  %s1461_s10 = scalar_select %p340_p9, 1, 0  ;;  %1182 = vmatpush3.bf16.msra.mxu0 %v1281_v12  ;;  %v1295_v8 = vld [vmem:[%s1722_s3 + $0x58] sm:$0xff]  }
  0x18   : > { %v322_v23 = vunpack.c.l.bf16 %v321_v22  ;;  %s331_s15 = sshra.s32 %s1741_s25, 3  ;;  %1183 = vmatprep.subr.bf16.mxu0 %v1282_v24  ;;  %v329_v39 = vstv %s328_s14 }
  0x19   : > { %v304_v18 = vadd.f32 %v1434_v7, %v294_v13  ;;  %v305_v19 = vadd.f32 %v1434_v7, %v295_v14  ;;  %v303_v20 = vadd.f32 %v1434_v7, %v293_v15  ;;  %v306_v21 = vadd.f32 %v1434_v7, %v296_v16  ;;  %s1083_s16 = sshll.u32 %s331_s15, 2  ;;  %1166 = vmatpush3.bf16.msra.mxu1 %v1291_v3 }
  0x1a   : > { %v323_v29 = vmul.f32 %v1423_v2, %v322_v23  ;;  %s334_s17 = scalar_lea.vmem %s1418_s12, %s1083_s16  ;;  %s342_s12 = scvt.s32.f32 %s1461_s10  ;;  %1167 = vmatprep.subr.bf16.mxu1 %v1293_v6  ;;  %v373_v13 = vadd.s32 8, %v1451_v17 }
  0x1b   : > { %v1466_v25 = vmax.f32 %v304_v18, 0.0  ;;  %v1468_v26 = vmax.f32 %v305_v19, 0.0  ;;  %v1470_v27 = vmax.f32 %v303_v20, 0.0  ;;  %v1472_v28 = vmax.f32 %v306_v21, 0.0  ;;  %v335_v35 = vld [vmem:[%s334_s17] sm:$0xf]  ;;  %1184 = vmatpush3.bf16.msra.mxu0 %v1282_v24 }
  0x1c   : > { %v324_v34 = vadd.f32 %v1434_v7, %v323_v29  ;;  %v336_v40 = vunpack.c.l.bf16 %v335_v35  ;;  %1185 = vmatprep.subr.bf16.mxu0 %v1283_v36  ;;  %v343_v47 = vstv %s342_s12  ;;  %v387_v16 = vand.u32 7, %v373_v13  ;;  %s1072_s10 = sshll.u32 %s1322_s19, 1 }
  0x1d   : > { %v347_v30 = vrot.slane %v1466_v25, 7  ;;  %v348_v31 = vrot.slane %v1468_v26, 7  ;;  %v346_v32 = vrot.slane %v1470_v27, 7  ;;  %v349_v33 = vrot.slane %v1472_v28, 7  ;;  %1168 = vmatpush3.bf16.msra.mxu1 %v1293_v6  ;;  %s1681_s11 = sadd.s32 %s1318_s18, %s1072_s10 }
  0x1e   : > { %v325_v41 = vmax.f32 %v324_v34, 0.0  ;;  %v337_v43 = vmul.f32 %v1423_v2, %v336_v40  ;;  %v361_v49 = vrot.slane %v1470_v27, 1  ;;  %v362_v58 = vrot.slane %v1466_v25, 1  ;;  %1169 = vmatprep.subr.bf16.mxu1 %v1295_v8  ;;  %s1073_s13 = sshll.u32 %s1681_s11, 2  ;;  %p265_p11 = scmp.lt.s32.totalorder %s1681_s11, 3 }
  0x1f   : > { %v1488_v37 = vsel %vm353_vm0, %v347_v30, %v348_v31  ;;  %v1492_v38 = vsel %vm353_vm0, %v346_v32, %v347_v30  ;;  %v355_v42 = vsel %vm353_vm0, %v348_v31, %v349_v33  ;;  %1186 = vmatpush3.bf16.msra.mxu0 %v1283_v36  ;;  %v363_v59 = vrot.slane %v1468_v26, 1  ;;  %p256_p10 = scmp.lt.s32.totalorder %s1073_s13, 15 }
  0x20   : > { %492 = vrot.lane.b32.xlu1 %v1488_v37, %s1336_s28  ;;  %490 = vrot.lane.b32.xlu0 %v1492_v38, %s1336_s28  ;;  %v1502_v44 = vmul.f32 %v329_v39, %v325_v41  ;;  %v338_v46 = vadd.f32 %v1434_v7, %v337_v43  ;;  %v1555_v0 = vsel %vm366_vm1, %v361_v49, %v362_v58  ;;  %v364_v1 = vrot.slane %v1472_v28, 1  ;;  %s1745_s11 = smov (!%p265_p11, %s1681_s11), 3 }
  0x21   : > { %1191 = vmatprep.subr.bf16.mxu0 %v1507_v45  ;;  %v1551_v63 = vsel %vm366_vm1, %v362_v58, %v363_v59  ;;  %v1258_v7 = vpack.i.bf16 %v1466_v25, %v1470_v27  ;;  %1170 = vmatpush3.bf16.msra.mxu1 %v1295_v8  ;;  %v1263_v9 = vpack.i.bf16 %v1472_v28, %v1468_v26  ;;  %v1601_v18 = vadd.s32 24, %v1451_v17  ;;  %v1288_v58 = vld [vmem:[%s1722_s3 + $0x70] sm:$0xff]   ;;  %s1743_s13 = smov (!%p256_p10, %s1073_s13), 15  ;;  %s1076_s18 = sshll.u32 %s1745_s11, 1 }
  0x22   : > { %v345_v48 = vrot.slane %v1502_v44, 7  ;;  %v360_v50 = vrot.slane %v1502_v44, 1  ;;  %v339_v52 = vmax.f32 %v338_v46, 0.0  ;;  %v1569_v5 = vsel %vm366_vm1, %v363_v59, %v364_v1  ;;  %s1074_s14 = sshll.u32 %s1743_s13, 2  ;;  %s268_s27 = scalar_lea.vmem %s1724_s5, %s1076_s18 }
  0x23   : > { %v1268_v12 = vpack.i.bf16 %v1468_v26, %v1466_v25  ;;  %v1604_v19 = vadd.s32 16, %v1451_v17  ;;  %v380_v20 = vand.u32 7, %v1451_v17  ;;  %vm425_vm2 = vcmp.gt.s32.totalorder %v387_v16, 0  ;;  %s259_s17 = scalar_lea.vmem %s1723_s4, %s1074_s14 }
  0x24   : > { %494 = vrot.lane.b32.xlu1 %v355_v42, %s1336_s28  ;;  %501 = vrot.lane.b32.xlu0 %v1492_v38, %s1337_s30  ;;  %v1522_v53 = vsel %vm353_vm0, %v345_v48, %v346_v32  ;;  %v1526_v54 = vsel %vm366_vm1, %v360_v50, %v361_v49  ;;  %v344_v55 = vmul.f32 %v343_v47, %v339_v52  ;;  %v401_v23 = vand.u32 7, %v1601_v18 }
  0x25   : > { %v394_v24 = vand.u32 7, %v1604_v19  ;;  %vm424_vm4 = vcmp.gt.s32.totalorder %v380_v20, 0  ;;  %vm437_vm9 = vcmp.lt.s32.totalorder %v387_v16, 7  ;;  %vm436_vm10 = vcmp.lt.s32.totalorder %v380_v20, 7 }
  0x26   : > { %v350_v57 = vrot.slane %v344_v55, 7  ;;  %v365_v2 = vrot.slane %v344_v55, 1  ;;  %v1273_v11 = vpack.i.bf16 %v344_v55, %v1472_v28  ;;  %v1338_v28 = vmov 0.0  }
  0x27   : > { %v1085_v29 = vsel %vm425_vm2, 1.0, %v1338_v28  ;;  %vm427_vm6 = vcmp.gt.s32.totalorder %v401_v23, 0  ;;  %vm426_vm7 = vcmp.gt.s32.totalorder %v394_v24, 0  ;;  %v1084_v17 = vsel %vm424_vm4, 1.0, %v1338_v28 }
  0x28   : > { %503 = vrot.lane.b32.xlu1 %v1488_v37, %s1337_s30  ;;  %488 = vrot.lane.b32.xlu0 %v1522_v53, %s1336_s28  ;;  %v354_v60 = vsel %vm353_vm0, %v349_v33, %v350_v57  ;;  %v1542_v61 = vsel %vm353_vm0, %v350_v57, %v345_v48  ;;  %v367_v4 = vsel %vm366_vm1, %v364_v1, %v365_v2  ;;  %v1087_v39 = vsel %vm427_vm6, 1.0, %v1338_v28 }
  0x29   : > { %v372_v10 = vsel %vm366_vm1, %v365_v2, %v360_v50  ;;  %v1086_v40 = vsel %vm426_vm7, 1.0, %v1338_v28  ;;  %v1089_v59 = vsel %vm437_vm9, 1.0, %v1338_v28  ;;  %v1290_v2 = vld [vmem:[%s1722_s3 + $0x78] sm:$0xff]   ;;  %vm438_vm11 = vcmp.lt.s32.totalorder %v394_v24, 7 }
  0x2a   : > { %vm439_vm12 = vcmp.lt.s32.totalorder %v401_v23, 7 }
  0x2b   : > { %v1091_v18 = vsel %vm439_vm12, 1.0, %v1338_v28 }
  0x2c   : > { %507 = vrot.lane.b32.xlu1 %v354_v60, %s1337_s30  ;;  %505 = vrot.lane.b32.xlu0 %v355_v42, %s1337_s30  ;;  %v1088_v60 = vsel %vm436_vm10, 1.0, %v1338_v28 }
  0x30   : > { %757 = vrot.lane.b32.xlu1 %v1551_v63, %s1336_s28  ;;  %755 = vrot.lane.b32.xlu0 %v1555_v0, %s1336_s28 }
  0x34   : > { %761 = vrot.lane.b32.xlu1 %v367_v4, %s1336_s28  ;;  %759 = vrot.lane.b32.xlu0 %v1569_v5, %s1336_s28 }
  0x38   : > { %770 = vrot.lane.b32.xlu1 %v1569_v5, %s1337_s30  ;;  %768 = vrot.lane.b32.xlu0 %v1551_v63, %s1337_s30 }
  0x3c   : > { %772 = vrot.lane.b32.xlu1 %v367_v4, %s1337_s30  ;;  %1259 = vrot.lane.b32.xlu0 %v1258_v7, %s1336_s28 }
  0x40   : > { %1264 = vrot.lane.b32.xlu1 %v1263_v9, %s1336_s28  ;;  %774 = vrot.lane.b32.xlu0 %v372_v10, %s1337_s30 }
  0x44   : > { %1274 = vrot.lane.b32.xlu1 %v1273_v11, %s1337_s30  ;;  %1269 = vrot.lane.b32.xlu0 %v1268_v12, %s1337_s30 }
  0x92   : > { %v493_v14 = vpop.permute.xlu1 %492  ;;  %v491_v15 = vpop.permute.xlu0 %490 }
  0x93   : > { %v515_v30 = vsel %vm513_vm3, %v1522_v53, %v491_v15  ;;  %v516_v42 = vsel %vm513_vm3, %v1492_v38, %v493_v14  ;;  %v1286_v38 = vld [vmem:[%s1722_s3 + $0x68] sm:$0xff]   ;;  %v1090_v15 = vsel %vm438_vm11, 1.0, %v1338_v28 }
  0x94   : > { %v1294_v14 = vld [vmem:[%s1722_s3 + $0x88] sm:$0xff]  }
  0x96   : > { %v495_v21 = vpop.permute.xlu1 %494  ;;  %v502_v22 = vpop.permute.xlu0 %501 }
  0x97   : > { %v517_v43 = vsel %vm513_vm3, %v1488_v37, %v495_v21 }
  0x9a   : > { %v504_v31 = vpop.permute.xlu1 %503  ;;  %v489_v32 = vpop.permute.xlu0 %488 }
  0x9b   : > { %v520_v33 = vsel %vm518_vm5, %v515_v30, %v504_v31  ;;  %v514_v34 = vsel %vm513_vm3, %v1542_v61, %v489_v32 }
  0x9c   : > { %v524_v35 = vmul.f32 %v1085_v29, %v520_v33  ;;  %v519_v36 = vsel %vm518_vm5, %v514_v34, %v502_v22 }
  0x9d   : > { %v523_v41 = vmul.f32 %v1084_v17, %v519_v36 }
  0x9e   : > { %v508_v46 = vpop.permute.xlu1 %507  ;;  %v506_v47 = vpop.permute.xlu0 %505 }
  0x9f   : > { %v522_v48 = vsel %vm518_vm5, %v517_v43, %v508_v46  ;;  %v521_v49 = vsel %vm518_vm5, %v516_v42, %v506_v47  ;;  %v527_v50 = vpack.c.bf16 %v524_v35, %v523_v41 }
  0xa0   : > { %v526_v51 = vmul.f32 %v1087_v39, %v522_v48  ;;  %v525_v52 = vmul.f32 %v1086_v40, %v521_v49 }
  0xa1   : > { %1187 = vmatprep.mubr.msk.bf16.mxu0 %vm604_vm8, %v527_v50 }
  0xa2   : > { %v528_v53 = vpack.c.bf16 %v526_v51, %v525_v52  ;;  %v758_v55 = vpop.permute.xlu1 %757  ;;  %v756_v56 = vpop.permute.xlu0 %755 }
  0xa3   : > { %v781_v61 = vsel %vm513_vm3, %v1555_v0, %v758_v55 }
  0xa4   : > { %1188 = vmatmul.mubr.msk.bf16.vlgmr.msra.gmra.mrb[0].mxu0 %vm604_vm8, %v528_v53 }
  0xa5   : > { %1192 = vmatpush3.bf16.msra.mxu0 %v1507_v45  ;;  %v780_v45 = vsel %vm513_vm3, %v1526_v54, %v756_v56  ;;  %v1292_v54 = vld [vmem:[%s1722_s3 + $0x80] sm:$0xff]  }
  0xa6   : > { %v762_v37 = vpop.permute.xlu1 %761  ;;  %v760_v57 = vpop.permute.xlu0 %759  ;;  %1193 = vmatprep.subr.bf16.mxu0 %v1286_v38 }
  0xa7   : > { %v783_v10 = vsel %vm513_vm3, %v1569_v5, %v762_v37  ;;  %v782_v11 = vsel %vm513_vm3, %v1551_v63, %v760_v57 }
  0xa9   : > { %1194 = vmatpush3.bf16.msra.mxu0 %v1286_v38 }
  0xaa   : > { %v771_v62 = vpop.permute.xlu1 %770  ;;  %v769_v1 = vpop.permute.xlu0 %768  ;;  %1195 = vmatprep.subr.bf16.mxu0 %v1288_v58 }
  0xab   : > { %v785_v3 = vsel %vm518_vm5, %v781_v61, %v771_v62  ;;  %v784_v4 = vsel %vm518_vm5, %v780_v45, %v769_v1 }
  0xac   : > { %v789_v6 = vmul.f32 %v1089_v59, %v785_v3  ;;  %v788_v7 = vmul.f32 %v1088_v60, %v784_v4 }
  0xad   : > { %1196 = vmatpush3.bf16.msra.mxu0 %v1288_v58 }
  0xae   : > { %v792_v8 = vpack.c.bf16 %v789_v6, %v788_v7  ;;  %v773_v9 = vpop.permute.xlu1 %772  ;;  %v1260_v0 = vpop.permute.xlu0 %1259  ;;  %1197 = vmatprep.subr.bf16.mxu0 %v1290_v2 }
  0xaf   : > { %v786_v16 = vsel %vm518_vm5, %v782_v11, %v773_v9  ;;  %v1262_v20 = vunpack.i.h.bf16 %v1260_v0  ;;  %v1261_v5 = vunpack.i.l.bf16 %v1260_v0 }
  0xb0   : > { %1203 = vmatprep.mubr.msk.bf16.mxu0 %vm604_vm8, %v792_v8  ;;  %v790_v63 = vmul.f32 %v1090_v15, %v786_v16 }
  0xb1   : > { %1198 = vmatpush3.bf16.msra.mxu0 %v1290_v2  ;;  %v558_v34 = vsel %vm513_vm3, %v1502_v44, %v1261_v5  ;;  %v559_v35 = vsel %vm513_vm3, %v1470_v27, %v1262_v20 }
  0xb2   : > { %v1265_v12 = vpop.permute.xlu1 %1264  ;;  %v775_v13 = vpop.permute.xlu0 %774  ;;  %1199 = vmatprep.subr.bf16.mxu0 %v1292_v54 }
  0xb3   : > { %v787_v19 = vsel %vm518_vm5, %v783_v10, %v775_v13  ;;  %v1267_v21 = vunpack.i.h.bf16 %v1265_v12  ;;  %v1266_v22 = vunpack.i.l.bf16 %v1265_v12 }
  0xb4   : > { %v791_v23 = vmul.f32 %v1091_v18, %v787_v19 }
  0xb5   : > { %1200 = vmatpush3.bf16.msra.mxu0 %v1292_v54  ;;  %v561_v28 = vsel %vm513_vm3, %v1468_v26, %v1267_v21  ;;  %v560_v33 = vsel %vm513_vm3, %v1466_v25, %v1266_v22 }
  0xb6   : > { %v1275_v24 = vpop.permute.xlu1 %1274  ;;  %v1270_v29 = vpop.permute.xlu0 %1269  ;;  %1201 = vmatprep.subr.bf16.mxu0 %v1294_v14  ;;  %v793_v26 = vpack.c.bf16 %v791_v23, %v790_v63 }
  0xb7   : > { %v1277_v30 = vunpack.i.h.bf16 %v1275_v24  ;;  %v1276_v31 = vunpack.i.l.bf16 %v1275_v24  ;;  %v1272_v32 = vunpack.i.h.bf16 %v1270_v29  ;;  %v1271_v17 = vunpack.i.l.bf16 %v1270_v29 }
  0xb9   : > { %v564_v36 = vsel %vm518_vm5, %v560_v33, %v1276_v31  ;;  %v565_v39 = vsel %vm518_vm5, %v561_v28, %v1277_v30  ;;  %1202 = vmatpush3.bf16.msra.mxu0 %v1294_v14  ;;  %v562_v40 = vsel %vm518_vm5, %v558_v34, %v1271_v17  ;;  %v563_v41 = vsel %vm518_vm5, %v559_v35, %v1272_v32 }
  0xba   : > { %v567_v42 = vpack.c.bf16 %v565_v39, %v564_v36  ;;  %v566_v43 = vpack.c.bf16 %v563_v41, %v562_v40 }
  0xbc   : > { %1204 = vmatmul.mubr.msk.bf16.vlgmr.msra.gmra.mrb[0].mxu0 %vm604_vm8, %v793_v26  ;;  %1171 = vmatprep.mubr.msk.bf16.mxu1 %vm604_vm8, %v566_v43 }
  0xbd   : > { %1172 = vmatmul.mubr.msk.bf16.vlgmr.msra.gmra.mrb[0].mxu1 %vm604_vm8, %v567_v42 }
 0x18f   : > { %v1205_v25 = vpop.f32.mrb[0].mxu0 }
 0x190   : > { %v870_v27 = vpop.f32.mrb[1].mxu0  ;;  %v1173_v44 = vpop.f32.mrb[0].mxu1 }
 0x191   : > { %v1207_v46 = vadd.f32 %v1205_v25, %v1173_v44  ;;  %v1206_v47 = vpop.f32.mrb[2].mxu0  ;;  %v645_v48 = vpop.f32.mrb[1].mxu1 }
 0x192   : > { %v1208_v49 = vadd.f32 %v870_v27, %v645_v48  ;;  %v873_v50 = vpop.f32.mrb[3].mxu0  ;;  %v1174_v51 = vpop.f32.mrb[2].mxu1 }
 0x193   : > { %v1124_v52 = vpack.c.bf16 %v1207_v46, %v1207_v46  ;;  %v1209_v53 = vadd.f32 %v1206_v47, %v1174_v51  ;;  %v648_v55 = vpop.f32.mrb[3].mxu1  ;;  %v904_v57 = vmul.f32 %v1207_v46, %v1207_v46  ;;  %v892_v1 = vsel %vm513_vm3, %v1207_v46, 0.0 }
 0x194   : > { %v902_v56 = vmul.f32 %v1208_v49, %v1208_v49  ;;  %v1122_v38 = vpack.c.bf16 %v1208_v49, %v1208_v49  ;;  %v1210_v37 = vadd.f32 %v873_v50, %v648_v55  ;;  %v889_v59 = vsel %vm513_vm3, %v1208_v49, 0.0 }
 0x195   : > { %942 = vst.msk [vmem:[%s259_s17 + $0x8] sm:$0xf] %vm939_vm13, %v1124_v52  ;;  %v1125_v58 = vpack.c.bf16 %v1209_v53, %v1209_v53  ;;  %v905_v3 = vmul.f32 %v1209_v53, %v1209_v53  ;;  %v909_v8 = vsel %vm513_vm3, %v904_v57, 0.0  ;;  %v894_v9 = vsel %vm513_vm3, %v1209_v53, 0.0 }
 0x196   : > { %940 = vst.msk [vmem:[%s259_s17] sm:$0xf] %vm939_vm13, %v1122_v38  ;;  %v890_v60 = vsel %vm513_vm3, %v1210_v37, 0.0  ;;  %v903_v61 = vmul.f32 %v1210_v37, %v1210_v37  ;;  %v1123_v45 = vpack.c.bf16 %v1210_v37, %v1210_v37  ;;  %v906_v2 = vsel %vm513_vm3, %v902_v56, 0.0 }
 0x197   : > { %943 = vst.msk [vmem:[%s259_s17 + $0xc] sm:$0xf] %vm939_vm13, %v1125_v58  ;;  %v891_v62 = vadd.f32 %v890_v60, %v889_v59  ;;  %v911_v10 = vsel %vm513_vm3, %v905_v3, 0.0 }
 0x198   : > { %v907_v4 = vsel %vm513_vm3, %v903_v61, 0.0  ;;  %941 = vst.msk [vmem:[%s259_s17 + $0x4] sm:$0xf] %vm939_vm13, %v1123_v45 }
 0x199   : > { %v893_v6 = vadd.f32 %v892_v1, %v891_v62  ;;  %v908_v7 = vadd.f32 %v907_v4, %v906_v2 }
 0x19b   : > { %v895_v0 = vadd.f32 %v894_v9, %v893_v6  ;;  %v910_v54 = vadd.f32 %v909_v8, %v908_v7 }
 0x19d   : > { %v896_v11 = vrot.slane %v895_v0, 4  ;;  %v912_v12 = vadd.f32 %v911_v10, %v910_v54 }
 0x19f   : > { %v897_v13 = vadd.f32 %v896_v11, %v895_v0  ;;  %v913_v14 = vrot.slane %v912_v12, 4 }
 0x1a1   : > { %v898_v15 = vrot.slane %v897_v13, 2  ;;  %v914_v16 = vadd.f32 %v913_v14, %v912_v12 }
 0x1a3   : > { %v899_v18 = vadd.f32 %v898_v15, %v897_v13  ;;  %v915_v19 = vrot.slane %v914_v16, 2 }
 0x1a5   : > { %v900_v20 = vrot.slane %v899_v18, 1  ;;  %v916_v5 = vadd.f32 %v915_v19, %v914_v16 }
 0x1a7   : > { %v917_v21 = vrot.slane %v916_v5, 1  ;;  %v901_v22 = vadd.f32 %v900_v20, %v899_v18 }
 0x1a9   : > { %v918_v63 = vadd.f32 %v917_v21, %v916_v5 }
 0x1ab   : > { %v920_v23 = vsel %vm919_vm14, %v901_v22, %v918_v63 }
 0x1ac   : > { %922 = vst.msk [vmem:[%s268_s27] sm:$0x3] %vm921_vm15, %v920_v23 }
 0x1ad PF: > { %s16_s22 = sadd.s32 1, %s1334_s22   ;;  %s1726_s18 = smov %s1326_s20 }
 0x1ae   : > { %p13_p12 = scmp.ge.s32.totalorder %s16_s22, 6   ;;  %s1727_s19 = smov %s1330_s21 }
 0x1af   : > { %s1728_s20 = smov %s1731_s23  ;;  %s1729_s21 = smov %s1735_s24 }
 0x1b0   :  { %15 = sbr.rel (!%p13_p12) target bundleno = 3 (0x3), region = 81 }

// kernel: bottleneck_forward.7
= control target key start
LH: loop header
LB: loop body
LE: loop exit
PB: predicated region body
PF: predicated region fallthrough
CT: control target
= control target key end

     0   :  { %s429_s0 = inlined_call_operand.vmem [shape: bf16[128,128], index: 0, kind: input, shape index: {}]   ;;  %s430_s1 = inlined_call_operand.vmem [shape: bf16[128,128], index: 1, kind: input, shape index: {}]   ;;  %s431_s2 = inlined_call_operand.vmem [shape: f32[1,128], index: 2, kind: input, shape index: {}]   ;;  %s432_s3 = inlined_call_operand.vmem [shape: f32[1,128], index: 3, kind: input, shape index: {}]   ;;  %s433_s4 = inlined_call_operand.hbm [shape: f32[128,128], index: 4, kind: output, shape index: {}]  }
   0x1   :  { %v195_v0 = vld [vmem:[%s429_s0] sm:$0xff]   ;;  %v258_v8 = vld [vmem:[%s429_s0 + $0x8] sm:$0xff]   ;;  %v259_v14 = vld [vmem:[%s429_s0 + $0x10] sm:$0xff]  }
   0x2   :  { %v227_v1 = vld [vmem:[%s430_s1] sm:$0xff]   ;;  %v196_v3 = vunpack.c.l.bf16 %v195_v0  ;;  %v197_v6 = vunpack.c.h.bf16 %v195_v0  ;;  %v265_v9 = vld [vmem:[%s430_s1 + $0x8] sm:$0xff]   ;;  %v200_v10 = vunpack.c.l.bf16 %v258_v8  ;;  %v201_v12 = vunpack.c.h.bf16 %v258_v8  ;;  %v266_v15 = vld [vmem:[%s430_s1 + $0x10] sm:$0xff]  }
   0x3   :  { %v336_v2 = vld [vmem:[%s431_s2] ss:$0 sm:$0xff]  ;;  %v228_v4 = vunpack.c.l.bf16 %v227_v1  ;;  %v229_v7 = vunpack.c.h.bf16 %v227_v1  ;;  %v232_v11 = vunpack.c.l.bf16 %v265_v9  ;;  %v233_v13 = vunpack.c.h.bf16 %v265_v9  ;;  %v260_v16 = vld [vmem:[%s429_s0 + $0x18] sm:$0xff]  }
   0x4   :  { %v341_v5 = vld [vmem:[%s432_s3] ss:$0 sm:$0xff]  ;;  %v89_v17 = vmul.f32 %v196_v3, %v336_v2  ;;  %v90_v18 = vmul.f32 %v197_v6, %v336_v2  ;;  %v204_v19 = vunpack.c.l.bf16 %v259_v14  ;;  %v236_v20 = vunpack.c.l.bf16 %v266_v15  ;;  %v267_v21 = vld [vmem:[%s430_s1 + $0x18] sm:$0xff]  }
   0x5   :  { %v91_v22 = vmul.f32 %v200_v10, %v336_v2  ;;  %v92_v23 = vmul.f32 %v201_v12, %v336_v2  ;;  %v205_v24 = vunpack.c.h.bf16 %v259_v14  ;;  %v237_v25 = vunpack.c.h.bf16 %v266_v15 }
   0x6   :  { %v112_v26 = vadd.f32 %v341_v5, %v89_v17  ;;  %v113_v27 = vadd.f32 %v341_v5, %v90_v18  ;;  %v93_v28 = vmul.f32 %v204_v19, %v336_v2  ;;  %v208_v29 = vunpack.c.l.bf16 %v260_v16 }
   0x7   :  { %v114_v30 = vadd.f32 %v341_v5, %v91_v22  ;;  %v115_v31 = vadd.f32 %v341_v5, %v92_v23  ;;  %v94_v32 = vmul.f32 %v205_v24, %v336_v2  ;;  %v240_v33 = vunpack.c.l.bf16 %v267_v21 }
   0x8   :  { %9 = vsyncpa [#allocation3], 0  ;;  %v128_v34 = vadd.f32 %v228_v4, %v112_v26  ;;  %v129_v35 = vadd.f32 %v229_v7, %v113_v27  ;;  %v116_v36 = vadd.f32 %v341_v5, %v93_v28  ;;  %v95_v37 = vmul.f32 %v208_v29, %v336_v2  ;;  %v261_v42 = vld [vmem:[%s429_s0 + $0x20] sm:$0xff]   ;;  %v262_v52 = vld [vmem:[%s429_s0 + $0x28] sm:$0xff]  }
   0x9   :  { %v130_v38 = vadd.f32 %v232_v11, %v114_v30  ;;  %v131_v39 = vadd.f32 %v233_v13, %v115_v31  ;;  %v117_v40 = vadd.f32 %v341_v5, %v94_v32  ;;  %v209_v41 = vunpack.c.h.bf16 %v260_v16  ;;  %v268_v47 = vld [vmem:[%s430_s1 + $0x20] sm:$0xff]   ;;  %v269_v57 = vld [vmem:[%s430_s1 + $0x28] sm:$0xff]   ;;  %v263_v62 = vld [vmem:[%s429_s0 + $0x30] sm:$0xff]  }
   0xa   :  { %v144_v43 = vmax.f32 %v128_v34, 0.0  ;;  %v145_v44 = vmax.f32 %v129_v35, 0.0  ;;  %v132_v45 = vadd.f32 %v236_v20, %v116_v36  ;;  %v118_v46 = vadd.f32 %v341_v5, %v95_v37  ;;  %v270_v4 = vld [vmem:[%s430_s1 + $0x30] sm:$0xff]   ;;  %v264_v18 = vld [vmem:[%s429_s0 + $0x38] sm:$0xff]   ;;  %s299_s0 = smov [#allocation2]  }
   0xb   :  { %v146_v48 = vmax.f32 %v130_v38, 0.0  ;;  %v147_v49 = vmax.f32 %v131_v39, 0.0  ;;  %v133_v50 = vadd.f32 %v237_v25, %v117_v40  ;;  %v241_v51 = vunpack.c.h.bf16 %v267_v21  ;;  %v271_v23 = vld [vmem:[%s430_s1 + $0x38] sm:$0xff]   ;;  %s181_s1 = sshll.u32 %s299_s0, 4  ;;  %s182_s1 = int_to_ptr.vmem [resolvable:$true] %s181_s1 }
   0xc   :  { %160 = vst [vmem:[#allocation2] sm:$0xff] %v144_v43  ;;  %161 = vst [vmem:[#allocation2 + $0x8] sm:$0xff] %v145_v44  ;;  %v148_v53 = vmax.f32 %v132_v45, 0.0  ;;  %v134_v54 = vadd.f32 %v240_v33, %v118_v46  ;;  %v96_v55 = vmul.f32 %v209_v41, %v336_v2  ;;  %v212_v56 = vunpack.c.l.bf16 %v261_v42  ;;  %s275_s23 = scalar_lea.vmem %s182_s1, 2048  ;;  %p280_p1 = scmp.lt.s32.totalorder %s182_s1, %s182_s1 }
   0xd   :  { %162 = vst [vmem:[#allocation2 + $0x10] sm:$0xff] %v146_v48  ;;  %163 = vst [vmem:[#allocation2 + $0x18] sm:$0xff] %v147_v49  ;;  %v149_v58 = vmax.f32 %v133_v50, 0.0  ;;  %v244_v59 = vunpack.c.l.bf16 %v268_v47  ;;  %v213_v60 = vunpack.c.h.bf16 %v261_v42  ;;  %v245_v61 = vunpack.c.h.bf16 %v268_v47  ;;  %p276_p0 = scmp.ne.s32.totalorder %s182_s1, %s275_s23  ;;  %p281_p2 = scmp.lt.s32.totalorder %s275_s23, %s275_s23 }
   0xe   :  { %164 = vst [vmem:[#allocation2 + $0x20] sm:$0xff] %v148_v53  ;;  %v150_v63 = vmax.f32 %v134_v54, 0.0  ;;  %v119_v0 = vadd.f32 %v341_v5, %v96_v55  ;;  %v97_v1 = vmul.f32 %v212_v56, %v336_v2  ;;  %v216_v3 = vunpack.c.l.bf16 %v262_v52 }
   0xf   :  { %165 = vst [vmem:[#allocation2 + $0x28] sm:$0xff] %v149_v58  ;;  %v98_v6 = vmul.f32 %v213_v60, %v336_v2  ;;  %v248_v7 = vunpack.c.l.bf16 %v269_v57  ;;  %v217_v8 = vunpack.c.h.bf16 %v262_v52  ;;  %v249_v9 = vunpack.c.h.bf16 %v269_v57  ;;  %p282_p3 = por %p281_p2, %p280_p1 }
  0x10   :  { %166 = vst [vmem:[#allocation2 + $0x30] sm:$0xff] %v150_v63  ;;  %v135_v10 = vadd.f32 %v241_v51, %v119_v0  ;;  %v120_v11 = vadd.f32 %v341_v5, %v97_v1  ;;  %v99_v12 = vmul.f32 %v216_v3, %v336_v2  ;;  %v220_v13 = vunpack.c.l.bf16 %v263_v62 }
  0x11   :  { %v121_v14 = vadd.f32 %v341_v5, %v98_v6  ;;  %v100_v15 = vmul.f32 %v217_v8, %v336_v2  ;;  %v252_v16 = vunpack.c.l.bf16 %v270_v4  ;;  %v221_v17 = vunpack.c.h.bf16 %v263_v62  ;;  %p283_p4 = pnand %p282_p3, %p276_p0 }
  0x12   :  { %v151_v19 = vmax.f32 %v135_v10, 0.0  ;;  %v136_v20 = vadd.f32 %v244_v59, %v120_v11  ;;  %v122_v21 = vadd.f32 %v341_v5, %v99_v12  ;;  %v101_v22 = vmul.f32 %v220_v13, %v336_v2 }
  0x13   :  { %v137_v24 = vadd.f32 %v245_v61, %v121_v14  ;;  %v123_v25 = vadd.f32 %v341_v5, %v100_v15  ;;  %v253_v26 = vunpack.c.h.bf16 %v270_v4  ;;  %v102_v27 = vmul.f32 %v221_v17, %v336_v2 }
  0x14   :  { %167 = vst [vmem:[#allocation2 + $0x38] sm:$0xff] %v151_v19  ;;  %v152_v28 = vmax.f32 %v136_v20, 0.0  ;;  %v138_v29 = vadd.f32 %v248_v7, %v122_v21  ;;  %v124_v30 = vadd.f32 %v341_v5, %v101_v22  ;;  %v224_v31 = vunpack.c.l.bf16 %v264_v18 }
  0x15   :  { %v153_v32 = vmax.f32 %v137_v24, 0.0  ;;  %v139_v33 = vadd.f32 %v249_v9, %v123_v25  ;;  %v125_v34 = vadd.f32 %v341_v5, %v102_v27  ;;  %v256_v35 = vunpack.c.l.bf16 %v271_v23 }
  0x16   :  { %168 = vst [vmem:[#allocation2 + $0x40] sm:$0xff] %v152_v28  ;;  %v154_v36 = vmax.f32 %v138_v29, 0.0  ;;  %v140_v37 = vadd.f32 %v252_v16, %v124_v30  ;;  %v103_v38 = vmul.f32 %v224_v31, %v336_v2  ;;  %v225_v39 = vunpack.c.h.bf16 %v264_v18 }
  0x17   :  { %169 = vst [vmem:[#allocation2 + $0x48] sm:$0xff] %v153_v32  ;;  %v155_v40 = vmax.f32 %v139_v33, 0.0  ;;  %v141_v41 = vadd.f32 %v253_v26, %v125_v34  ;;  %v257_v44 = vunpack.c.h.bf16 %v271_v23 }
  0x18   :  { %170 = vst [vmem:[#allocation2 + $0x50] sm:$0xff] %v154_v36  ;;  %v156_v42 = vmax.f32 %v140_v37, 0.0  ;;  %v126_v43 = vadd.f32 %v341_v5, %v103_v38  ;;  %v104_v45 = vmul.f32 %v225_v39, %v336_v2 }
  0x19   :  { %171 = vst [vmem:[#allocation2 + $0x58] sm:$0xff] %v155_v40  ;;  %v157_v46 = vmax.f32 %v141_v41, 0.0 }
  0x1a   :  { %172 = vst [vmem:[#allocation2 + $0x60] sm:$0xff] %v156_v42  ;;  %v142_v47 = vadd.f32 %v256_v35, %v126_v43  ;;  %v127_v48 = vadd.f32 %v341_v5, %v104_v45 }
  0x1b   :  { %173 = vst [vmem:[#allocation2 + $0x68] sm:$0xff] %v157_v46 }
  0x1c   :  { %v158_v49 = vmax.f32 %v142_v47, 0.0  ;;  %v143_v50 = vadd.f32 %v257_v44, %v127_v48 }
  0x1e   :  { %174 = vst [vmem:[#allocation2 + $0x70] sm:$0xff] %v158_v49  ;;  %v159_v51 = vmax.f32 %v143_v50, 0.0 }
  0x20   :  { %175 = vst [vmem:[#allocation2 + $0x78] sm:$0xff] %v159_v51 }
  0x21   :  { %286 = shalt.err (!%p283_p4)
}
  0x22   :  { %s287_s26 = scalar_lea.hbm %s433_s4, 2048 }
  0x23   :  { %p288_p5 = scmp.ne.s32.totalorder %s433_s4, %s287_s26  ;;  %p291_p6 = scmp.lt.u32.totalorder %s287_s26, %s433_s4 }
  0x25   :  { %p293_p7 = pnand %p291_p6, %p288_p5 }
  0x27   :  { %296 = shalt.err (!%p293_p7)
}
  0x28   :  { %s300_s29 = smov 128   ;;  %s301_s30 = smov 8  }
  0x29   :  { %187 = dma.vmem_to_hbm [thread:$0]  %s182_s1, 2048, %s433_s4, [#allocation3], %s300_s29, %s300_s29, %s301_s30  }
  0x2a   :  { %297 = dma.done.wait [#allocation3], 2048  }
  0x2b   :  { %298 = vsyncadd [#allocation3], 4294965248 }
  0x2c   :  { %191 = vsyncpa [#allocation3], 1 }

</bundles_post_ra>
